<compile_context>
chip_gen: v7x
topology: tpu7x:2x2x1
jax: 0.10.0
libtpu: 0.0.40
codegen_flags: <defaults>
</compile_context>

<pallas_src>
import functools

import jax
import jax.numpy as jnp
from jax.experimental import pallas as pl
from jax.experimental.pallas import tpu as pltpu  # noqa: F401  (TPU backend import)


# --------------------------------------------------------------------------
# Fused kernel builder: multi-layer LSTM recurrence + deconv-on-1x1 (dense).
# No grid; every operand is a full VMEM-resident block (all shapes are tiny).
# --------------------------------------------------------------------------
def _build_fused_kernel(num_layers, T, B, H, In):
    f32 = jnp.float32

    def fused_lstm_deconv_kernel(x_ref, *refs):
        layer_refs = refs[:num_layers]          # packed per-layer params
        deconv_ref = refs[num_layers]           # packed [W_flat; b_flat]
        out_ref = refs[num_layers + 1]

        # ---- Layer 0: unpack params, hoist the batched input projection ----
        p0 = layer_refs[0][...]                 # (In + H + 1, 4H)
        w_ih0 = p0[:In]                         # (In, 4H)
        w_hh0 = p0[In:In + H]                   # (H, 4H)
        b0 = p0[In + H:In + H + 1]              # (1, 4H)

        # Batched over all T timesteps, bias folded once; rows ordered (b, t).
        xp0 = jnp.dot(x_ref[...].astype(f32), w_ih0, preferred_element_type=f32) + b0
        xp0 = xp0.reshape(B, T, 4 * H)          # layout-trivial (T == sublane tile)

        # ---- Layers >= 1: stacked [W_ih^T; W_hh^T] for the fused [x; h] matmul ----
        w_stack, w_ih_only, biases = [], [], []
        for l in range(1, num_layers):
            pl_ = layer_refs[l][...]            # (2H + 1, 4H)
            w_stack.append(pl_[:2 * H])         # (2H, 4H)
            w_ih_only.append(pl_[:H])           # (H, 4H)   (used only at t == 0)
            biases.append(pl_[2 * H:2 * H + 1]) # (1, 4H)

        h = [None] * num_layers
        c = [None] * num_layers

        def step(l, t):
            # -- fused gate pre-activations: one matmul per step --
            if l == 0:
                gates = xp0[:, t, :]                                       # (B, 4H)
                if t > 0:
                    gates = gates + jnp.dot(h[0], w_hh0,
                                            preferred_element_type=f32)
            else:
                if t == 0:      # h_l(t-1) == 0: only the input projection
                    gates = jnp.dot(h[l - 1], w_ih_only[l - 1],
                                    preferred_element_type=f32) + biases[l - 1]
                else:           # fused [h_below_t ; h_l(t-1)] @ [W_ih; W_hh]
                    hx = jnp.concatenate([h[l - 1], h[l]], axis=1)         # (B, 2H)
                    gates = jnp.dot(hx, w_stack[l - 1],
                                    preferred_element_type=f32) + biases[l - 1]

            # -- packed nonlinearities: one sigmoid + one tanh over (B, 4H) --
            sig = jax.nn.sigmoid(gates)
            tnh = jnp.tanh(gates)
            i_g = sig[:, 0 * H:1 * H]
            f_g = sig[:, 1 * H:2 * H]
            g_g = tnh[:, 2 * H:3 * H]
            o_g = sig[:, 3 * H:4 * H]

            if t == 0:                      # c0 == 0 -> skip f*c
                c[l] = i_g * g_g
            else:
                c[l] = f_g * c[l] + i_g * g_g
            h[l] = o_g * jnp.tanh(c[l])

        # ---- Wavefront schedule over (layer, time) ----
        # Within a wave process layers high -> low so h[l-1] still holds timestep t
        # when layer l consumes it. Critical path: T + L - 1 waves.
        for w in range(T + num_layers - 1):
            l_hi = min(num_layers - 1, w)
            l_lo = max(0, w - T + 1)
            for l in range(l_hi, l_lo - 1, -1):
                step(l, w - l)

        # ---- Fused "deconv": ConvTranspose2d on a 1x1 input == dense layer ----
        pd = deconv_ref[...]                    # (H + 1, N_pad)
        wd = pd[:H]
        bd = pd[H:H + 1]
        out_ref[...] = jnp.dot(h[num_layers - 1], wd,
                               preferred_element_type=f32) + bd

    return fused_lstm_deconv_kernel


# --------------------------------------------------------------------------
# Wrapper: one pallas_call for the whole module forward.
# --------------------------------------------------------------------------
def lstm_module_forward(x, params, *, hidden_size, latent_size, kernel_size):
    """x: (B, T, input_size), batch_first (matches PyTorch)."""
    B, T, In = x.shape
    H = hidden_size
    num_layers = len(params["lstm_packed"])
    N = latent_size * kernel_size * kernel_size
    N_pad = params["deconv_packed"].shape[1]

    # Free reshape (no transpose, no extra HBM pass): rows ordered (b, t).
    x2 = x.reshape(B * T, In).astype(jnp.float32)

    kernel = _build_fused_kernel(num_layers, T, B, H, In)
    out_pad = pl.pallas_call(
        kernel,
        out_shape=jax.ShapeDtypeStruct((B, N_pad), jnp.float32),
    )(x2, *params["lstm_packed"], params["deconv_packed"])

    return out_pad[:, :N].reshape(B, latent_size, kernel_size, kernel_size)  # NCHW


# --------------------------------------------------------------------------
# Deterministic parameter init (PyTorch-like uniform(-1/sqrt(H), 1/sqrt(H)))
# --------------------------------------------------------------------------
def init_params(key, input_size, hidden_size, latent_size, num_layers, kernel_size):
    H = hidden_size
    bound = 1.0 / jnp.sqrt(jnp.float32(H))
    lstm_packed, lstm_ref = [], []
    for layer in range(num_layers):
        in_dim = input_size if layer == 0 else H
        key, k1, k2, k3, k4 = jax.random.split(key, 5)
        w_ih = jax.random.uniform(k1, (4 * H, in_dim), jnp.float32, -bound, bound)
        w_hh = jax.random.uniform(k2, (4 * H, H), jnp.float32, -bound, bound)
        b_ih = jax.random.uniform(k3, (4 * H,), jnp.float32, -bound, bound)
        b_hh = jax.random.uniform(k4, (4 * H,), jnp.float32, -bound, bound)
        w_ih_t = w_ih.T                                   # (in_dim, 4H)
        w_hh_t = w_hh.T                                   # (H, 4H)
        bias = (b_ih + b_hh)[None, :]                     # (1, 4H)
        # Single packed operand per layer: [W_ih^T; W_hh^T; bias] (one DMA each).
        lstm_packed.append(jnp.concatenate([w_ih_t, w_hh_t, bias], axis=0))
        lstm_ref.append({"w_ih_t": w_ih_t, "w_hh_t": w_hh_t, "bias": bias})

    # ConvTranspose2d weight: (in_ch=H, out_ch=L, k, k); bias: (L,)
    key, kw, kb = jax.random.split(key, 3)
    cbound = 1.0 / jnp.sqrt(jnp.float32(H * kernel_size * kernel_size))
    conv_w = jax.random.uniform(kw, (H, latent_size, kernel_size, kernel_size),
                                jnp.float32, -cbound, cbound)
    conv_b = jax.random.uniform(kb, (latent_size,), jnp.float32, -cbound, cbound)
    N = latent_size * kernel_size * kernel_size
    N_pad = max(128, ((N + 127) // 128) * 128)
    conv_w_flat = conv_w.reshape(H, N)
    conv_b_flat = jnp.repeat(conv_b, kernel_size * kernel_size)[None, :]   # (1, N)
    # Packed, lane-dense-padded [W_flat; b_flat] -> (H + 1, N_pad), one DMA.
    deconv_packed = jnp.zeros((H + 1, N_pad), jnp.float32)
    deconv_packed = deconv_packed.at[:H, :N].set(conv_w_flat)
    deconv_packed = deconv_packed.at[H:H + 1, :N].set(conv_b_flat)

    return {
        "lstm_packed": lstm_packed,
        "lstm_ref": lstm_ref,
        "conv_w_flat": conv_w_flat,
        "conv_b_flat": conv_b_flat,
        "deconv_packed": deconv_packed,
    }


# --------------------------------------------------------------------------
# Pure-JAX reference (sanity check of the Pallas path)
# --------------------------------------------------------------------------
def reference_forward(x, params, *, hidden_size, latent_size, kernel_size):
    B, T, _ = x.shape
    H = hidden_size
    seq = x.astype(jnp.float32)
    for layer in params["lstm_ref"]:
        h = jnp.zeros((B, H), jnp.float32)
        c = jnp.zeros((B, H), jnp.float32)
        outs = []
        for t in range(T):
            gates = seq[:, t, :] @ layer["w_ih_t"] + h @ layer["w_hh_t"] + layer["bias"]
            i_g = jax.nn.sigmoid(gates[:, 0 * H:1 * H])
            f_g = jax.nn.sigmoid(gates[:, 1 * H:2 * H])
            g_g = jnp.tanh(gates[:, 2 * H:3 * H])
            o_g = jax.nn.sigmoid(gates[:, 3 * H:4 * H])
            c = f_g * c + i_g * g_g
            h = o_g * jnp.tanh(c)
            outs.append(h)
        seq = jnp.stack(outs, axis=1)
    h_last = seq[:, -1, :]
    out = h_last @ params["conv_w_flat"] + params["conv_b_flat"]
    return out.reshape(B, latent_size, kernel_size, kernel_size)


if __name__ == "__main__":
    input_size, hidden_size, latent_size = 8, 32, 4
    num_layers, kernel_size = 2, 3
    B, T = 2, 8

    key = jax.random.PRNGKey(0)
    key, kx = jax.random.split(key)
    x = jax.random.normal(kx, (B, T, input_size), jnp.float32)

    params = init_params(key, input_size, hidden_size, latent_size, num_layers,
                         kernel_size)

    fwd = jax.jit(functools.partial(lstm_module_forward, hidden_size=hidden_size,
                                    latent_size=latent_size, kernel_size=kernel_size))
    out = jax.block_until_ready(fwd(x, params))
    assert out.shape == (B, latent_size, kernel_size, kernel_size), out.shape

    ref = reference_forward(x, params, hidden_size=hidden_size,
                            latent_size=latent_size, kernel_size=kernel_size)
    max_err = float(jnp.max(jnp.abs(out - ref)))
    assert jnp.allclose(out, ref, atol=1e-4, rtol=1e-4), max_err

    print("KERNEL_OK")
</pallas_src>

<mosaic_0001>
module attributes {stable_mosaic.version = 11 : i64} {
  func.func @fused_lstm_deconv_kernel(%arg0: memref<16x8xf32, #tpu.memory_space<vmem>>, %arg1: memref<41x128xf32, #tpu.memory_space<vmem>>, %arg2: memref<65x128xf32, #tpu.memory_space<vmem>>, %arg3: memref<33x128xf32, #tpu.memory_space<vmem>>, %arg4: memref<2x128xf32, #tpu.memory_space<vmem>>) attributes {dimension_semantics = [], scalar_prefetch = 0 : i64, scratch_operands = 0 : i64, tpu.core_type = #tpu.core_type<tc>} {
    %c0 = arith.constant 0 : index
    %c0_0 = arith.constant 0 : index
    %0 = vector.load %arg1[%c0, %c0_0] : memref<41x128xf32, #tpu.memory_space<vmem>>, vector<41x128xf32>
    %1 = vector.extract_strided_slice %0 {offsets = [0, 0], sizes = [8, 128], strides = [1, 1]} : vector<41x128xf32> to vector<8x128xf32>
    %2 = vector.extract_strided_slice %0 {offsets = [8, 0], sizes = [32, 128], strides = [1, 1]} : vector<41x128xf32> to vector<32x128xf32>
    %3 = vector.extract_strided_slice %0 {offsets = [40, 0], sizes = [1, 128], strides = [1, 1]} : vector<41x128xf32> to vector<1x128xf32>
    %c0_1 = arith.constant 0 : index
    %c0_2 = arith.constant 0 : index
    %4 = vector.load %arg0[%c0_1, %c0_2] : memref<16x8xf32, #tpu.memory_space<vmem>>, vector<16x8xf32>
    %cst = arith.constant dense<0.000000e+00> : vector<16x128xf32>
    %5 = tpu.matmul %4, %1, %cst {dimension_numbers = #tpu.dot_dimension_numbers<[1], [0], [0], [1], [0, 0, 1, 1], [], []>} : vector<16x8xf32>, vector<8x128xf32>, vector<16x128xf32> -> vector<16x128xf32>
    %6 = vector.broadcast %3 : vector<1x128xf32> to vector<16x128xf32>
    %7 = arith.addf %5, %6 : vector<16x128xf32>
    %8 = vector.shape_cast %7 : vector<16x128xf32> to vector<2x8x128xf32>
    %c0_3 = arith.constant 0 : index
    %c0_4 = arith.constant 0 : index
    %9 = vector.load %arg2[%c0_3, %c0_4] : memref<65x128xf32, #tpu.memory_space<vmem>>, vector<65x128xf32>
    %10 = vector.extract_strided_slice %9 {offsets = [0, 0], sizes = [64, 128], strides = [1, 1]} : vector<65x128xf32> to vector<64x128xf32>
    %11 = vector.extract_strided_slice %9 {offsets = [0, 0], sizes = [32, 128], strides = [1, 1]} : vector<65x128xf32> to vector<32x128xf32>
    %12 = vector.extract_strided_slice %9 {offsets = [64, 0], sizes = [1, 128], strides = [1, 1]} : vector<65x128xf32> to vector<1x128xf32>
    %13 = vector.extract_strided_slice %8 {offsets = [0, 0, 0], sizes = [2, 1, 128], strides = [1, 1, 1]} : vector<2x8x128xf32> to vector<2x1x128xf32>
    %14 = vector.shape_cast %13 : vector<2x1x128xf32> to vector<2x128xf32>
    %15 = arith.negf %14 : vector<2x128xf32>
    %16 = math.exp %15 : vector<2x128xf32>
    %cst_5 = arith.constant 1.000000e+00 : f32
    %17 = vector.broadcast %cst_5 : f32 to vector<2x128xf32>
    %18 = arith.addf %17, %16 : vector<2x128xf32>
    %19 = arith.divf %17, %18 : vector<2x128xf32>
    %20 = math.tanh %14 : vector<2x128xf32>
    %21 = vector.extract_strided_slice %19 {offsets = [0, 0], sizes = [2, 32], strides = [1, 1]} : vector<2x128xf32> to vector<2x32xf32>
    %22 = vector.extract_strided_slice %20 {offsets = [0, 64], sizes = [2, 32], strides = [1, 1]} : vector<2x128xf32> to vector<2x32xf32>
    %23 = vector.extract_strided_slice %19 {offsets = [0, 96], sizes = [2, 32], strides = [1, 1]} : vector<2x128xf32> to vector<2x32xf32>
    %24 = arith.mulf %21, %22 : vector<2x32xf32>
    %25 = math.tanh %24 : vector<2x32xf32>
    %26 = arith.mulf %23, %25 : vector<2x32xf32>
    %cst_6 = arith.constant dense<0.000000e+00> : vector<2x128xf32>
    %27 = tpu.matmul %26, %11, %cst_6 {dimension_numbers = #tpu.dot_dimension_numbers<[1], [0], [0], [1], [0, 0, 1, 1], [], []>} : vector<2x32xf32>, vector<32x128xf32>, vector<2x128xf32> -> vector<2x128xf32>
    %28 = vector.broadcast %12 : vector<1x128xf32> to vector<2x128xf32>
    %29 = arith.addf %27, %28 : vector<2x128xf32>
    %30 = arith.negf %29 : vector<2x128xf32>
    %31 = math.exp %30 : vector<2x128xf32>
    %cst_7 = arith.constant 1.000000e+00 : f32
    %32 = vector.broadcast %cst_7 : f32 to vector<2x128xf32>
    %33 = arith.addf %32, %31 : vector<2x128xf32>
    %34 = arith.divf %32, %33 : vector<2x128xf32>
    %35 = math.tanh %29 : vector<2x128xf32>
    %36 = vector.extract_strided_slice %34 {offsets = [0, 0], sizes = [2, 32], strides = [1, 1]} : vector<2x128xf32> to vector<2x32xf32>
    %37 = vector.extract_strided_slice %35 {offsets = [0, 64], sizes = [2, 32], strides = [1, 1]} : vector<2x128xf32> to vector<2x32xf32>
    %38 = vector.extract_strided_slice %34 {offsets = [0, 96], sizes = [2, 32], strides = [1, 1]} : vector<2x128xf32> to vector<2x32xf32>
    %39 = arith.mulf %36, %37 : vector<2x32xf32>
    %40 = math.tanh %39 : vector<2x32xf32>
    %41 = arith.mulf %38, %40 : vector<2x32xf32>
    %42 = vector.extract_strided_slice %8 {offsets = [0, 1, 0], sizes = [2, 1, 128], strides = [1, 1, 1]} : vector<2x8x128xf32> to vector<2x1x128xf32>
    %43 = vector.shape_cast %42 : vector<2x1x128xf32> to vector<2x128xf32>
    %cst_8 = arith.constant dense<0.000000e+00> : vector<2x128xf32>
    %44 = tpu.matmul %26, %2, %cst_8 {dimension_numbers = #tpu.dot_dimension_numbers<[1], [0], [0], [1], [0, 0, 1, 1], [], []>} : vector<2x32xf32>, vector<32x128xf32>, vector<2x128xf32> -> vector<2x128xf32>
    %45 = arith.addf %43, %44 : vector<2x128xf32>
    %46 = arith.negf %45 : vector<2x128xf32>
    %47 = math.exp %46 : vector<2x128xf32>
    %cst_9 = arith.constant 1.000000e+00 : f32
    %48 = vector.broadcast %cst_9 : f32 to vector<2x128xf32>
    %49 = arith.addf %48, %47 : vector<2x128xf32>
    %50 = arith.divf %48, %49 : vector<2x128xf32>
    %51 = math.tanh %45 : vector<2x128xf32>
    %52 = vector.extract_strided_slice %50 {offsets = [0, 0], sizes = [2, 32], strides = [1, 1]} : vector<2x128xf32> to vector<2x32xf32>
    %53 = vector.extract_strided_slice %50 {offsets = [0, 32], sizes = [2, 32], strides = [1, 1]} : vector<2x128xf32> to vector<2x32xf32>
    %54 = vector.extract_strided_slice %51 {offsets = [0, 64], sizes = [2, 32], strides = [1, 1]} : vector<2x128xf32> to vector<2x32xf32>
    %55 = vector.extract_strided_slice %50 {offsets = [0, 96], sizes = [2, 32], strides = [1, 1]} : vector<2x128xf32> to vector<2x32xf32>
    %56 = arith.mulf %53, %24 : vector<2x32xf32>
    %57 = arith.mulf %52, %54 : vector<2x32xf32>
    %58 = arith.addf %56, %57 : vector<2x32xf32>
    %59 = math.tanh %58 : vector<2x32xf32>
    %60 = arith.mulf %55, %59 : vector<2x32xf32>
    %61 = tpu.concatenate %60, %41 in 1 : vector<2x32xf32>, vector<2x32xf32> -> vector<2x64xf32>
    %cst_10 = arith.constant dense<0.000000e+00> : vector<2x128xf32>
    %62 = tpu.matmul %61, %10, %cst_10 {dimension_numbers = #tpu.dot_dimension_numbers<[1], [0], [0], [1], [0, 0, 1, 1], [], []>} : vector<2x64xf32>, vector<64x128xf32>, vector<2x128xf32> -> vector<2x128xf32>
    %63 = vector.broadcast %12 : vector<1x128xf32> to vector<2x128xf32>
    %64 = arith.addf %62, %63 : vector<2x128xf32>
    %65 = arith.negf %64 : vector<2x128xf32>
    %66 = math.exp %65 : vector<2x128xf32>
    %cst_11 = arith.constant 1.000000e+00 : f32
    %67 = vector.broadcast %cst_11 : f32 to vector<2x128xf32>
    %68 = arith.addf %67, %66 : vector<2x128xf32>
    %69 = arith.divf %67, %68 : vector<2x128xf32>
    %70 = math.tanh %64 : vector<2x128xf32>
    %71 = vector.extract_strided_slice %69 {offsets = [0, 0], sizes = [2, 32], strides = [1, 1]} : vector<2x128xf32> to vector<2x32xf32>
    %72 = vector.extract_strided_slice %69 {offsets = [0, 32], sizes = [2, 32], strides = [1, 1]} : vector<2x128xf32> to vector<2x32xf32>
    %73 = vector.extract_strided_slice %70 {offsets = [0, 64], sizes = [2, 32], strides = [1, 1]} : vector<2x128xf32> to vector<2x32xf32>
    %74 = vector.extract_strided_slice %69 {offsets = [0, 96], sizes = [2, 32], strides = [1, 1]} : vector<2x128xf32> to vector<2x32xf32>
    %75 = arith.mulf %72, %39 : vector<2x32xf32>
    %76 = arith.mulf %71, %73 : vector<2x32xf32>
    %77 = arith.addf %75, %76 : vector<2x32xf32>
    %78 = math.tanh %77 : vector<2x32xf32>
    %79 = arith.mulf %74, %78 : vector<2x32xf32>
    %80 = vector.extract_strided_slice %8 {offsets = [0, 2, 0], sizes = [2, 1, 128], strides = [1, 1, 1]} : vector<2x8x128xf32> to vector<2x1x128xf32>
    %81 = vector.shape_cast %80 : vector<2x1x128xf32> to vector<2x128xf32>
    %cst_12 = arith.constant dense<0.000000e+00> : vector<2x128xf32>
    %82 = tpu.matmul %60, %2, %cst_12 {dimension_numbers = #tpu.dot_dimension_numbers<[1], [0], [0], [1], [0, 0, 1, 1], [], []>} : vector<2x32xf32>, vector<32x128xf32>, vector<2x128xf32> -> vector<2x128xf32>
    %83 = arith.addf %81, %82 : vector<2x128xf32>
    %84 = arith.negf %83 : vector<2x128xf32>
    %85 = math.exp %84 : vector<2x128xf32>
    %cst_13 = arith.constant 1.000000e+00 : f32
    %86 = vector.broadcast %cst_13 : f32 to vector<2x128xf32>
    %87 = arith.addf %86, %85 : vector<2x128xf32>
    %88 = arith.divf %86, %87 : vector<2x128xf32>
    %89 = math.tanh %83 : vector<2x128xf32>
    %90 = vector.extract_strided_slice %88 {offsets = [0, 0], sizes = [2, 32], strides = [1, 1]} : vector<2x128xf32> to vector<2x32xf32>
    %91 = vector.extract_strided_slice %88 {offsets = [0, 32], sizes = [2, 32], strides = [1, 1]} : vector<2x128xf32> to vector<2x32xf32>
    %92 = vector.extract_strided_slice %89 {offsets = [0, 64], sizes = [2, 32], strides = [1, 1]} : vector<2x128xf32> to vector<2x32xf32>
    %93 = vector.extract_strided_slice %88 {offsets = [0, 96], sizes = [2, 32], strides = [1, 1]} : vector<2x128xf32> to vector<2x32xf32>
    %94 = arith.mulf %91, %58 : vector<2x32xf32>
    %95 = arith.mulf %90, %92 : vector<2x32xf32>
    %96 = arith.addf %94, %95 : vector<2x32xf32>
    %97 = math.tanh %96 : vector<2x32xf32>
    %98 = arith.mulf %93, %97 : vector<2x32xf32>
    %99 = tpu.concatenate %98, %79 in 1 : vector<2x32xf32>, vector<2x32xf32> -> vector<2x64xf32>
    %cst_14 = arith.constant dense<0.000000e+00> : vector<2x128xf32>
    %100 = tpu.matmul %99, %10, %cst_14 {dimension_numbers = #tpu.dot_dimension_numbers<[1], [0], [0], [1], [0, 0, 1, 1], [], []>} : vector<2x64xf32>, vector<64x128xf32>, vector<2x128xf32> -> vector<2x128xf32>
    %101 = vector.broadcast %12 : vector<1x128xf32> to vector<2x128xf32>
    %102 = arith.addf %100, %101 : vector<2x128xf32>
    %103 = arith.negf %102 : vector<2x128xf32>
    %104 = math.exp %103 : vector<2x128xf32>
    %cst_15 = arith.constant 1.000000e+00 : f32
    %105 = vector.broadcast %cst_15 : f32 to vector<2x128xf32>
    %106 = arith.addf %105, %104 : vector<2x128xf32>
    %107 = arith.divf %105, %106 : vector<2x128xf32>
    %108 = math.tanh %102 : vector<2x128xf32>
    %109 = vector.extract_strided_slice %107 {offsets = [0, 0], sizes = [2, 32], strides = [1, 1]} : vector<2x128xf32> to vector<2x32xf32>
    %110 = vector.extract_strided_slice %107 {offsets = [0, 32], sizes = [2, 32], strides = [1, 1]} : vector<2x128xf32> to vector<2x32xf32>
    %111 = vector.extract_strided_slice %108 {offsets = [0, 64], sizes = [2, 32], strides = [1, 1]} : vector<2x128xf32> to vector<2x32xf32>
    %112 = vector.extract_strided_slice %107 {offsets = [0, 96], sizes = [2, 32], strides = [1, 1]} : vector<2x128xf32> to vector<2x32xf32>
    %113 = arith.mulf %110, %77 : vector<2x32xf32>
    %114 = arith.mulf %109, %111 : vector<2x32xf32>
    %115 = arith.addf %113, %114 : vector<2x32xf32>
    %116 = math.tanh %115 : vector<2x32xf32>
    %117 = arith.mulf %112, %116 : vector<2x32xf32>
    %118 = vector.extract_strided_slice %8 {offsets = [0, 3, 0], sizes = [2, 1, 128], strides = [1, 1, 1]} : vector<2x8x128xf32> to vector<2x1x128xf32>
    %119 = vector.shape_cast %118 : vector<2x1x128xf32> to vector<2x128xf32>
    %cst_16 = arith.constant dense<0.000000e+00> : vector<2x128xf32>
    %120 = tpu.matmul %98, %2, %cst_16 {dimension_numbers = #tpu.dot_dimension_numbers<[1], [0], [0], [1], [0, 0, 1, 1], [], []>} : vector<2x32xf32>, vector<32x128xf32>, vector<2x128xf32> -> vector<2x128xf32>
    %121 = arith.addf %119, %120 : vector<2x128xf32>
    %122 = arith.negf %121 : vector<2x128xf32>
    %123 = math.exp %122 : vector<2x128xf32>
    %cst_17 = arith.constant 1.000000e+00 : f32
    %124 = vector.broadcast %cst_17 : f32 to vector<2x128xf32>
    %125 = arith.addf %124, %123 : vector<2x128xf32>
    %126 = arith.divf %124, %125 : vector<2x128xf32>
    %127 = math.tanh %121 : vector<2x128xf32>
    %128 = vector.extract_strided_slice %126 {offsets = [0, 0], sizes = [2, 32], strides = [1, 1]} : vector<2x128xf32> to vector<2x32xf32>
    %129 = vector.extract_strided_slice %126 {offsets = [0, 32], sizes = [2, 32], strides = [1, 1]} : vector<2x128xf32> to vector<2x32xf32>
    %130 = vector.extract_strided_slice %127 {offsets = [0, 64], sizes = [2, 32], strides = [1, 1]} : vector<2x128xf32> to vector<2x32xf32>
    %131 = vector.extract_strided_slice %126 {offsets = [0, 96], sizes = [2, 32], strides = [1, 1]} : vector<2x128xf32> to vector<2x32xf32>
    %132 = arith.mulf %129, %96 : vector<2x32xf32>
    %133 = arith.mulf %128, %130 : vector<2x32xf32>
    %134 = arith.addf %132, %133 : vector<2x32xf32>
    %135 = math.tanh %134 : vector<2x32xf32>
    %136 = arith.mulf %131, %135 : vector<2x32xf32>
    %137 = tpu.concatenate %136, %117 in 1 : vector<2x32xf32>, vector<2x32xf32> -> vector<2x64xf32>
    %cst_18 = arith.constant dense<0.000000e+00> : vector<2x128xf32>
    %138 = tpu.matmul %137, %10, %cst_18 {dimension_numbers = #tpu.dot_dimension_numbers<[1], [0], [0], [1], [0, 0, 1, 1], [], []>} : vector<2x64xf32>, vector<64x128xf32>, vector<2x128xf32> -> vector<2x128xf32>
    %139 = vector.broadcast %12 : vector<1x128xf32> to vector<2x128xf32>
    %140 = arith.addf %138, %139 : vector<2x128xf32>
    %141 = arith.negf %140 : vector<2x128xf32>
    %142 = math.exp %141 : vector<2x128xf32>
    %cst_19 = arith.constant 1.000000e+00 : f32
    %143 = vector.broadcast %cst_19 : f32 to vector<2x128xf32>
    %144 = arith.addf %143, %142 : vector<2x128xf32>
    %145 = arith.divf %143, %144 : vector<2x128xf32>
    %146 = math.tanh %140 : vector<2x128xf32>
    %147 = vector.extract_strided_slice %145 {offsets = [0, 0], sizes = [2, 32], strides = [1, 1]} : vector<2x128xf32> to vector<2x32xf32>
    %148 = vector.extract_strided_slice %145 {offsets = [0, 32], sizes = [2, 32], strides = [1, 1]} : vector<2x128xf32> to vector<2x32xf32>
    %149 = vector.extract_strided_slice %146 {offsets = [0, 64], sizes = [2, 32], strides = [1, 1]} : vector<2x128xf32> to vector<2x32xf32>
    %150 = vector.extract_strided_slice %145 {offsets = [0, 96], sizes = [2, 32], strides = [1, 1]} : vector<2x128xf32> to vector<2x32xf32>
    %151 = arith.mulf %148, %115 : vector<2x32xf32>
    %152 = arith.mulf %147, %149 : vector<2x32xf32>
    %153 = arith.addf %151, %152 : vector<2x32xf32>
    %154 = math.tanh %153 : vector<2x32xf32>
    %155 = arith.mulf %150, %154 : vector<2x32xf32>
    %156 = vector.extract_strided_slice %8 {offsets = [0, 4, 0], sizes = [2, 1, 128], strides = [1, 1, 1]} : vector<2x8x128xf32> to vector<2x1x128xf32>
    %157 = vector.shape_cast %156 : vector<2x1x128xf32> to vector<2x128xf32>
    %cst_20 = arith.constant dense<0.000000e+00> : vector<2x128xf32>
    %158 = tpu.matmul %136, %2, %cst_20 {dimension_numbers = #tpu.dot_dimension_numbers<[1], [0], [0], [1], [0, 0, 1, 1], [], []>} : vector<2x32xf32>, vector<32x128xf32>, vector<2x128xf32> -> vector<2x128xf32>
    %159 = arith.addf %157, %158 : vector<2x128xf32>
    %160 = arith.negf %159 : vector<2x128xf32>
    %161 = math.exp %160 : vector<2x128xf32>
    %cst_21 = arith.constant 1.000000e+00 : f32
    %162 = vector.broadcast %cst_21 : f32 to vector<2x128xf32>
    %163 = arith.addf %162, %161 : vector<2x128xf32>
    %164 = arith.divf %162, %163 : vector<2x128xf32>
    %165 = math.tanh %159 : vector<2x128xf32>
    %166 = vector.extract_strided_slice %164 {offsets = [0, 0], sizes = [2, 32], strides = [1, 1]} : vector<2x128xf32> to vector<2x32xf32>
    %167 = vector.extract_strided_slice %164 {offsets = [0, 32], sizes = [2, 32], strides = [1, 1]} : vector<2x128xf32> to vector<2x32xf32>
    %168 = vector.extract_strided_slice %165 {offsets = [0, 64], sizes = [2, 32], strides = [1, 1]} : vector<2x128xf32> to vector<2x32xf32>
    %169 = vector.extract_strided_slice %164 {offsets = [0, 96], sizes = [2, 32], strides = [1, 1]} : vector<2x128xf32> to vector<2x32xf32>
    %170 = arith.mulf %167, %134 : vector<2x32xf32>
    %171 = arith.mulf %166, %168 : vector<2x32xf32>
    %172 = arith.addf %170, %171 : vector<2x32xf32>
    %173 = math.tanh %172 : vector<2x32xf32>
    %174 = arith.mulf %169, %173 : vector<2x32xf32>
    %175 = tpu.concatenate %174, %155 in 1 : vector<2x32xf32>, vector<2x32xf32> -> vector<2x64xf32>
    %cst_22 = arith.constant dense<0.000000e+00> : vector<2x128xf32>
    %176 = tpu.matmul %175, %10, %cst_22 {dimension_numbers = #tpu.dot_dimension_numbers<[1], [0], [0], [1], [0, 0, 1, 1], [], []>} : vector<2x64xf32>, vector<64x128xf32>, vector<2x128xf32> -> vector<2x128xf32>
    %177 = vector.broadcast %12 : vector<1x128xf32> to vector<2x128xf32>
    %178 = arith.addf %176, %177 : vector<2x128xf32>
    %179 = arith.negf %178 : vector<2x128xf32>
    %180 = math.exp %179 : vector<2x128xf32>
    %cst_23 = arith.constant 1.000000e+00 : f32
    %181 = vector.broadcast %cst_23 : f32 to vector<2x128xf32>
    %182 = arith.addf %181, %180 : vector<2x128xf32>
    %183 = arith.divf %181, %182 : vector<2x128xf32>
    %184 = math.tanh %178 : vector<2x128xf32>
    %185 = vector.extract_strided_slice %183 {offsets = [0, 0], sizes = [2, 32], strides = [1, 1]} : vector<2x128xf32> to vector<2x32xf32>
    %186 = vector.extract_strided_slice %183 {offsets = [0, 32], sizes = [2, 32], strides = [1, 1]} : vector<2x128xf32> to vector<2x32xf32>
    %187 = vector.extract_strided_slice %184 {offsets = [0, 64], sizes = [2, 32], strides = [1, 1]} : vector<2x128xf32> to vector<2x32xf32>
    %188 = vector.extract_strided_slice %183 {offsets = [0, 96], sizes = [2, 32], strides = [1, 1]} : vector<2x128xf32> to vector<2x32xf32>
    %189 = arith.mulf %186, %153 : vector<2x32xf32>
    %190 = arith.mulf %185, %187 : vector<2x32xf32>
    %191 = arith.addf %189, %190 : vector<2x32xf32>
    %192 = math.tanh %191 : vector<2x32xf32>
    %193 = arith.mulf %188, %192 : vector<2x32xf32>
    %194 = vector.extract_strided_slice %8 {offsets = [0, 5, 0], sizes = [2, 1, 128], strides = [1, 1, 1]} : vector<2x8x128xf32> to vector<2x1x128xf32>
    %195 = vector.shape_cast %194 : vector<2x1x128xf32> to vector<2x128xf32>
    %cst_24 = arith.constant dense<0.000000e+00> : vector<2x128xf32>
    %196 = tpu.matmul %174, %2, %cst_24 {dimension_numbers = #tpu.dot_dimension_numbers<[1], [0], [0], [1], [0, 0, 1, 1], [], []>} : vector<2x32xf32>, vector<32x128xf32>, vector<2x128xf32> -> vector<2x128xf32>
    %197 = arith.addf %195, %196 : vector<2x128xf32>
    %198 = arith.negf %197 : vector<2x128xf32>
    %199 = math.exp %198 : vector<2x128xf32>
    %cst_25 = arith.constant 1.000000e+00 : f32
    %200 = vector.broadcast %cst_25 : f32 to vector<2x128xf32>
    %201 = arith.addf %200, %199 : vector<2x128xf32>
    %202 = arith.divf %200, %201 : vector<2x128xf32>
    %203 = math.tanh %197 : vector<2x128xf32>
    %204 = vector.extract_strided_slice %202 {offsets = [0, 0], sizes = [2, 32], strides = [1, 1]} : vector<2x128xf32> to vector<2x32xf32>
    %205 = vector.extract_strided_slice %202 {offsets = [0, 32], sizes = [2, 32], strides = [1, 1]} : vector<2x128xf32> to vector<2x32xf32>
    %206 = vector.extract_strided_slice %203 {offsets = [0, 64], sizes = [2, 32], strides = [1, 1]} : vector<2x128xf32> to vector<2x32xf32>
    %207 = vector.extract_strided_slice %202 {offsets = [0, 96], sizes = [2, 32], strides = [1, 1]} : vector<2x128xf32> to vector<2x32xf32>
    %208 = arith.mulf %205, %172 : vector<2x32xf32>
    %209 = arith.mulf %204, %206 : vector<2x32xf32>
    %210 = arith.addf %208, %209 : vector<2x32xf32>
    %211 = math.tanh %210 : vector<2x32xf32>
    %212 = arith.mulf %207, %211 : vector<2x32xf32>
    %213 = tpu.concatenate %212, %193 in 1 : vector<2x32xf32>, vector<2x32xf32> -> vector<2x64xf32>
    %cst_26 = arith.constant dense<0.000000e+00> : vector<2x128xf32>
    %214 = tpu.matmul %213, %10, %cst_26 {dimension_numbers = #tpu.dot_dimension_numbers<[1], [0], [0], [1], [0, 0, 1, 1], [], []>} : vector<2x64xf32>, vector<64x128xf32>, vector<2x128xf32> -> vector<2x128xf32>
    %215 = vector.broadcast %12 : vector<1x128xf32> to vector<2x128xf32>
    %216 = arith.addf %214, %215 : vector<2x128xf32>
    %217 = arith.negf %216 : vector<2x128xf32>
    %218 = math.exp %217 : vector<2x128xf32>
    %cst_27 = arith.constant 1.000000e+00 : f32
    %219 = vector.broadcast %cst_27 : f32 to vector<2x128xf32>
    %220 = arith.addf %219, %218 : vector<2x128xf32>
    %221 = arith.divf %219, %220 : vector<2x128xf32>
    %222 = math.tanh %216 : vector<2x128xf32>
    %223 = vector.extract_strided_slice %221 {offsets = [0, 0], sizes = [2, 32], strides = [1, 1]} : vector<2x128xf32> to vector<2x32xf32>
    %224 = vector.extract_strided_slice %221 {offsets = [0, 32], sizes = [2, 32], strides = [1, 1]} : vector<2x128xf32> to vector<2x32xf32>
    %225 = vector.extract_strided_slice %222 {offsets = [0, 64], sizes = [2, 32], strides = [1, 1]} : vector<2x128xf32> to vector<2x32xf32>
    %226 = vector.extract_strided_slice %221 {offsets = [0, 96], sizes = [2, 32], strides = [1, 1]} : vector<2x128xf32> to vector<2x32xf32>
    %227 = arith.mulf %224, %191 : vector<2x32xf32>
    %228 = arith.mulf %223, %225 : vector<2x32xf32>
    %229 = arith.addf %227, %228 : vector<2x32xf32>
    %230 = math.tanh %229 : vector<2x32xf32>
    %231 = arith.mulf %226, %230 : vector<2x32xf32>
    %232 = vector.extract_strided_slice %8 {offsets = [0, 6, 0], sizes = [2, 1, 128], strides = [1, 1, 1]} : vector<2x8x128xf32> to vector<2x1x128xf32>
    %233 = vector.shape_cast %232 : vector<2x1x128xf32> to vector<2x128xf32>
    %cst_28 = arith.constant dense<0.000000e+00> : vector<2x128xf32>
    %234 = tpu.matmul %212, %2, %cst_28 {dimension_numbers = #tpu.dot_dimension_numbers<[1], [0], [0], [1], [0, 0, 1, 1], [], []>} : vector<2x32xf32>, vector<32x128xf32>, vector<2x128xf32> -> vector<2x128xf32>
    %235 = arith.addf %233, %234 : vector<2x128xf32>
    %236 = arith.negf %235 : vector<2x128xf32>
    %237 = math.exp %236 : vector<2x128xf32>
    %cst_29 = arith.constant 1.000000e+00 : f32
    %238 = vector.broadcast %cst_29 : f32 to vector<2x128xf32>
    %239 = arith.addf %238, %237 : vector<2x128xf32>
    %240 = arith.divf %238, %239 : vector<2x128xf32>
    %241 = math.tanh %235 : vector<2x128xf32>
    %242 = vector.extract_strided_slice %240 {offsets = [0, 0], sizes = [2, 32], strides = [1, 1]} : vector<2x128xf32> to vector<2x32xf32>
    %243 = vector.extract_strided_slice %240 {offsets = [0, 32], sizes = [2, 32], strides = [1, 1]} : vector<2x128xf32> to vector<2x32xf32>
    %244 = vector.extract_strided_slice %241 {offsets = [0, 64], sizes = [2, 32], strides = [1, 1]} : vector<2x128xf32> to vector<2x32xf32>
    %245 = vector.extract_strided_slice %240 {offsets = [0, 96], sizes = [2, 32], strides = [1, 1]} : vector<2x128xf32> to vector<2x32xf32>
    %246 = arith.mulf %243, %210 : vector<2x32xf32>
    %247 = arith.mulf %242, %244 : vector<2x32xf32>
    %248 = arith.addf %246, %247 : vector<2x32xf32>
    %249 = math.tanh %248 : vector<2x32xf32>
    %250 = arith.mulf %245, %249 : vector<2x32xf32>
    %251 = tpu.concatenate %250, %231 in 1 : vector<2x32xf32>, vector<2x32xf32> -> vector<2x64xf32>
    %cst_30 = arith.constant dense<0.000000e+00> : vector<2x128xf32>
    %252 = tpu.matmul %251, %10, %cst_30 {dimension_numbers = #tpu.dot_dimension_numbers<[1], [0], [0], [1], [0, 0, 1, 1], [], []>} : vector<2x64xf32>, vector<64x128xf32>, vector<2x128xf32> -> vector<2x128xf32>
    %253 = vector.broadcast %12 : vector<1x128xf32> to vector<2x128xf32>
    %254 = arith.addf %252, %253 : vector<2x128xf32>
    %255 = arith.negf %254 : vector<2x128xf32>
    %256 = math.exp %255 : vector<2x128xf32>
    %cst_31 = arith.constant 1.000000e+00 : f32
    %257 = vector.broadcast %cst_31 : f32 to vector<2x128xf32>
    %258 = arith.addf %257, %256 : vector<2x128xf32>
    %259 = arith.divf %257, %258 : vector<2x128xf32>
    %260 = math.tanh %254 : vector<2x128xf32>
    %261 = vector.extract_strided_slice %259 {offsets = [0, 0], sizes = [2, 32], strides = [1, 1]} : vector<2x128xf32> to vector<2x32xf32>
    %262 = vector.extract_strided_slice %259 {offsets = [0, 32], sizes = [2, 32], strides = [1, 1]} : vector<2x128xf32> to vector<2x32xf32>
    %263 = vector.extract_strided_slice %260 {offsets = [0, 64], sizes = [2, 32], strides = [1, 1]} : vector<2x128xf32> to vector<2x32xf32>
    %264 = vector.extract_strided_slice %259 {offsets = [0, 96], sizes = [2, 32], strides = [1, 1]} : vector<2x128xf32> to vector<2x32xf32>
    %265 = arith.mulf %262, %229 : vector<2x32xf32>
    %266 = arith.mulf %261, %263 : vector<2x32xf32>
    %267 = arith.addf %265, %266 : vector<2x32xf32>
    %268 = math.tanh %267 : vector<2x32xf32>
    %269 = arith.mulf %264, %268 : vector<2x32xf32>
    %270 = vector.extract_strided_slice %8 {offsets = [0, 7, 0], sizes = [2, 1, 128], strides = [1, 1, 1]} : vector<2x8x128xf32> to vector<2x1x128xf32>
    %271 = vector.shape_cast %270 : vector<2x1x128xf32> to vector<2x128xf32>
    %cst_32 = arith.constant dense<0.000000e+00> : vector<2x128xf32>
    %272 = tpu.matmul %250, %2, %cst_32 {dimension_numbers = #tpu.dot_dimension_numbers<[1], [0], [0], [1], [0, 0, 1, 1], [], []>} : vector<2x32xf32>, vector<32x128xf32>, vector<2x128xf32> -> vector<2x128xf32>
    %273 = arith.addf %271, %272 : vector<2x128xf32>
    %274 = arith.negf %273 : vector<2x128xf32>
    %275 = math.exp %274 : vector<2x128xf32>
    %cst_33 = arith.constant 1.000000e+00 : f32
    %276 = vector.broadcast %cst_33 : f32 to vector<2x128xf32>
    %277 = arith.addf %276, %275 : vector<2x128xf32>
    %278 = arith.divf %276, %277 : vector<2x128xf32>
    %279 = math.tanh %273 : vector<2x128xf32>
    %280 = vector.extract_strided_slice %278 {offsets = [0, 0], sizes = [2, 32], strides = [1, 1]} : vector<2x128xf32> to vector<2x32xf32>
    %281 = vector.extract_strided_slice %278 {offsets = [0, 32], sizes = [2, 32], strides = [1, 1]} : vector<2x128xf32> to vector<2x32xf32>
    %282 = vector.extract_strided_slice %279 {offsets = [0, 64], sizes = [2, 32], strides = [1, 1]} : vector<2x128xf32> to vector<2x32xf32>
    %283 = vector.extract_strided_slice %278 {offsets = [0, 96], sizes = [2, 32], strides = [1, 1]} : vector<2x128xf32> to vector<2x32xf32>
    %284 = arith.mulf %281, %248 : vector<2x32xf32>
    %285 = arith.mulf %280, %282 : vector<2x32xf32>
    %286 = arith.addf %284, %285 : vector<2x32xf32>
    %287 = math.tanh %286 : vector<2x32xf32>
    %288 = arith.mulf %283, %287 : vector<2x32xf32>
    %289 = tpu.concatenate %288, %269 in 1 : vector<2x32xf32>, vector<2x32xf32> -> vector<2x64xf32>
    %cst_34 = arith.constant dense<0.000000e+00> : vector<2x128xf32>
    %290 = tpu.matmul %289, %10, %cst_34 {dimension_numbers = #tpu.dot_dimension_numbers<[1], [0], [0], [1], [0, 0, 1, 1], [], []>} : vector<2x64xf32>, vector<64x128xf32>, vector<2x128xf32> -> vector<2x128xf32>
    %291 = vector.broadcast %12 : vector<1x128xf32> to vector<2x128xf32>
    %292 = arith.addf %290, %291 : vector<2x128xf32>
    %293 = arith.negf %292 : vector<2x128xf32>
    %294 = math.exp %293 : vector<2x128xf32>
    %cst_35 = arith.constant 1.000000e+00 : f32
    %295 = vector.broadcast %cst_35 : f32 to vector<2x128xf32>
    %296 = arith.addf %295, %294 : vector<2x128xf32>
    %297 = arith.divf %295, %296 : vector<2x128xf32>
    %298 = math.tanh %292 : vector<2x128xf32>
    %299 = vector.extract_strided_slice %297 {offsets = [0, 0], sizes = [2, 32], strides = [1, 1]} : vector<2x128xf32> to vector<2x32xf32>
    %300 = vector.extract_strided_slice %297 {offsets = [0, 32], sizes = [2, 32], strides = [1, 1]} : vector<2x128xf32> to vector<2x32xf32>
    %301 = vector.extract_strided_slice %298 {offsets = [0, 64], sizes = [2, 32], strides = [1, 1]} : vector<2x128xf32> to vector<2x32xf32>
    %302 = vector.extract_strided_slice %297 {offsets = [0, 96], sizes = [2, 32], strides = [1, 1]} : vector<2x128xf32> to vector<2x32xf32>
    %303 = arith.mulf %300, %267 : vector<2x32xf32>
    %304 = arith.mulf %299, %301 : vector<2x32xf32>
    %305 = arith.addf %303, %304 : vector<2x32xf32>
    %306 = math.tanh %305 : vector<2x32xf32>
    %307 = arith.mulf %302, %306 : vector<2x32xf32>
    %c0_36 = arith.constant 0 : index
    %c0_37 = arith.constant 0 : index
    %308 = vector.load %arg3[%c0_36, %c0_37] : memref<33x128xf32, #tpu.memory_space<vmem>>, vector<33x128xf32>
    %309 = vector.extract_strided_slice %308 {offsets = [0, 0], sizes = [32, 128], strides = [1, 1]} : vector<33x128xf32> to vector<32x128xf32>
    %310 = vector.extract_strided_slice %308 {offsets = [32, 0], sizes = [1, 128], strides = [1, 1]} : vector<33x128xf32> to vector<1x128xf32>
    %cst_38 = arith.constant dense<0.000000e+00> : vector<2x128xf32>
    %311 = tpu.matmul %307, %309, %cst_38 {dimension_numbers = #tpu.dot_dimension_numbers<[1], [0], [0], [1], [0, 0, 1, 1], [], []>} : vector<2x32xf32>, vector<32x128xf32>, vector<2x128xf32> -> vector<2x128xf32>
    %312 = vector.broadcast %310 : vector<1x128xf32> to vector<2x128xf32>
    %313 = arith.addf %311, %312 : vector<2x128xf32>
    %c0_39 = arith.constant 0 : index
    %c0_40 = arith.constant 0 : index
    %314 = vector.load %arg4[%c0_39, %c0_40] : memref<2x128xf32, #tpu.memory_space<vmem>>, vector<2x128xf32>
    tpu.vector_store %arg4[%c0_39, %c0_40], %313 {strides = array<i32>} : memref<2x128xf32, #tpu.memory_space<vmem>>, vector<2x128xf32>,
    return
  }
}

</mosaic_0001>

<bundles_post_ra>
// kernel: lstm_module_forward.1
= control target key start
LH: loop header
LB: loop body
LE: loop exit
PB: predicated region body
PF: predicated region fallthrough
CT: control target
= control target key end

     0   :  { %9 = vsyncpa [#allocation3], 0  ;;  %s3479_s0 = inlined_call_operand.hbm [shape: f32[16,8], index: 0, kind: input, shape index: {}]   ;;  %s3480_s1 = inlined_call_operand.hbm [shape: f32[41,128], index: 1, kind: input, shape index: {}]   ;;  %s3481_s2 = inlined_call_operand.hbm [shape: f32[65,128], index: 2, kind: input, shape index: {}]   ;;  %s3482_s3 = inlined_call_operand.hbm [shape: f32[33,128], index: 3, kind: input, shape index: {}]   ;;  %s3483_s4 = inlined_call_operand.vmem [shape: f32[2,128], index: 4, kind: output, shape index: {}]  }
   0x1   :  { %10 = vsyncpa [#allocation5], 0 }
   0x2   :  { %11 = vsyncpa [#allocation8], 0  ;;  %s2991_s15 = smov [#allocation4]   ;;  %s2992_s17 = smov [#allocation2]  }
   0x3   :  { %s29_s16 = sshll.u32 %s2991_s15, 4  ;;  %s17_s18 = sshll.u32 %s2992_s17, 4  ;;  %s30_s16 = int_to_ptr.vmem [resolvable:$true] %s29_s16  ;;  %s3028_s18 = int_to_ptr.vmem [resolvable:$true] %s17_s18 }
   0x4   :  { %s2897_s21 = scalar_lea.hbm %s3480_s1, 768 }
   0x5   :  { %p2898_p0 = scmp.ne.s32.totalorder %s3480_s1, %s2897_s21  ;;  %p2901_p1 = scmp.lt.u32.totalorder %s2897_s21, %s3480_s1 }
   0x7   :  { %p2903_p2 = pnand %p2901_p1, %p2898_p0 }
   0x9   :  { %2906 = shalt.err (!%p2903_p2)
}
   0xa   :  { %s2907_s26 = scalar_lea.vmem %s30_s16, 768  ;;  %p2912_p4 = scmp.lt.s32.totalorder %s30_s16, %s30_s16 }
   0xb   :  { %p2908_p3 = scmp.ne.s32.totalorder %s30_s16, %s2907_s26  ;;  %p2913_p5 = scmp.lt.s32.totalorder %s2907_s26, %s2907_s26 }
   0xd   :  { %p2914_p6 = por %p2913_p5, %p2912_p4 }
   0xf   :  { %p2915_p7 = pnand %p2914_p6, %p2908_p3 }
  0x11   :  { %2918 = shalt.err (!%p2915_p7)
}
  0x12   :  { %s2993_s27 = smov 128   ;;  %s2994_s28 = smov 8  }
  0x13   :  { %35 = dma.hbm_to_vmem [thread:$0]  %s3480_s1, 768, %s30_s16, [#allocation5], %s2993_s27, %s2993_s27, %s2994_s28  }
  0x14   :  { %s2919_s7 = scalar_lea.hbm %s3479_s0, 256 }
  0x15   :  { %p2920_p8 = scmp.ne.s32.totalorder %s3479_s0, %s2919_s7  ;;  %p2923_p9 = scmp.lt.u32.totalorder %s2919_s7, %s3479_s0 }
  0x17   :  { %p2925_p10 = pnand %p2923_p9, %p2920_p8 }
  0x19   :  { %2928 = shalt.err (!%p2925_p10)
}
  0x1a   :  { %s2929_s12 = scalar_lea.vmem %s3028_s18, 256  ;;  %p2934_p12 = scmp.lt.s32.totalorder %s3028_s18, %s3028_s18 }
  0x1b   :  { %p2930_p11 = scmp.ne.s32.totalorder %s3028_s18, %s2929_s12  ;;  %p2935_p13 = scmp.lt.s32.totalorder %s2929_s12, %s2929_s12 }
  0x1d   :  { %p2936_p0 = por %p2935_p13, %p2934_p12 }
  0x1f   :  { %p2937_p1 = pnand %p2936_p0, %p2930_p11 }
  0x21   :  { %2940 = shalt.err (!%p2937_p1)
}
  0x22   :  { %23 = dma.hbm_to_vmem [thread:$0]  %s3479_s0, 256, %s3028_s18, [#allocation3], %s2993_s27, %s2993_s27, %s2994_s28  }
  0x23   :  { %s2995_s14 = smov [#allocation6]   ;;  %s2996_s16 = smov [#allocation7]  }
  0x24   :  { %s41_s15 = sshll.u32 %s2995_s14, 4  ;;  %s53_s17 = sshll.u32 %s2996_s16, 4  ;;  %s42_s15 = int_to_ptr.vmem [resolvable:$true] %s41_s15  ;;  %s3065_s17 = int_to_ptr.vmem [resolvable:$true] %s53_s17 }
  0x25   :  { %s2941_s21 = scalar_lea.hbm %s3481_s2, 1152 }
  0x26   :  { %p2942_p2 = scmp.ne.s32.totalorder %s3481_s2, %s2941_s21  ;;  %p2945_p3 = scmp.lt.u32.totalorder %s2941_s21, %s3481_s2 }
  0x28   :  { %p2947_p4 = pnand %p2945_p3, %p2942_p2 }
  0x2a   :  { %2950 = shalt.err (!%p2947_p4)
}
  0x2b   :  { %s2951_s0 = scalar_lea.vmem %s42_s15, 1152  ;;  %p2956_p6 = scmp.lt.s32.totalorder %s42_s15, %s42_s15 }
  0x2c   :  { %p2952_p5 = scmp.ne.s32.totalorder %s42_s15, %s2951_s0  ;;  %p2957_p7 = scmp.lt.s32.totalorder %s2951_s0, %s2951_s0 }
  0x2e   :  { %p2958_p8 = por %p2957_p7, %p2956_p6 }
  0x30   :  { %p2959_p9 = pnand %p2958_p8, %p2952_p5 }
  0x32   :  { %2962 = shalt.err (!%p2959_p9)
}
  0x33   :  { %47 = dma.hbm_to_vmem [thread:$0]  %s3481_s2, 1152, %s42_s15, [#allocation5], %s2993_s27, %s2993_s27, %s2994_s28  }
  0x34   :  { %s2963_s5 = scalar_lea.hbm %s3482_s3, 640 }
  0x35   :  { %p2964_p10 = scmp.ne.s32.totalorder %s3482_s3, %s2963_s5  ;;  %p2967_p11 = scmp.lt.u32.totalorder %s2963_s5, %s3482_s3 }
  0x37   :  { %p2969_p12 = pnand %p2967_p11, %p2964_p10 }
  0x39   :  { %2972 = shalt.err (!%p2969_p12)
}
  0x3a   :  { %s2973_s10 = scalar_lea.vmem %s3065_s17, 640  ;;  %p2978_p0 = scmp.lt.s32.totalorder %s3065_s17, %s3065_s17 }
  0x3b   :  { %p2974_p13 = scmp.ne.s32.totalorder %s3065_s17, %s2973_s10  ;;  %p2979_p1 = scmp.lt.s32.totalorder %s2973_s10, %s2973_s10 }
  0x3d   :  { %p2980_p2 = por %p2979_p1, %p2978_p0 }
  0x3f   :  { %p2981_p3 = pnand %p2980_p2, %p2974_p13 }
  0x41   :  { %2984 = shalt.err (!%p2981_p3)
}
  0x42   :  { %59 = dma.hbm_to_vmem [thread:$0]  %s3482_s3, 640, %s3065_s17, [#allocation8], %s2993_s27, %s2993_s27, %s2994_s28  }
  0x43   :  { %2985 = dma.done.wait [#allocation3], 256  }
  0x44   :  { %2986 = vsyncadd [#allocation3], 4294967040 }
  0x45   :  { %2987 = dma.done.wait [#allocation5], 1920  }
  0x46   :  { %2988 = vsyncadd [#allocation5], 4294965376 }
  0x47   :  { %2989 = dma.done.wait [#allocation8], 640  }
  0x48   :  { %2990 = vsyncadd [#allocation8], 4294966656  ;;  %vm84_vm0 = vcmask 64512   ;;  %v72_v0 = vld [vmem:[#allocation4] sm:$0xff]  ;;  %v78_v1 = vld [vmem:[#allocation2] sm:$0xff]  ;;  %s2997_s3 = smov 64  }
  0x49   :  { %v79_v2 = vld [vmem:[#allocation2 + $0x8] sm:$0xff]  ;;  %2317 = vmatprep.subr.mxu0 %v72_v0  ;;  %2319 = vmatprep.mubr.msk.f32.mxu0 %vm84_vm0, %v78_v1  ;;  %v2161_v3 = vld [vmem:[#allocation4 + $0x28] ss:$0 sm:$0xff]  ;;  %v166_v22 = vld [vmem:[#allocation6] sm:$0xff]  ;;  %v2998_v25 = vmov 0.0|0.0   ;;  %vm2999_vm1 = vmmov 0  }
  0x4a   :  { %2318 = vmatpush3.msra.mxu0 %v72_v0  ;;  %v167_v23 = vld [vmem:[#allocation6 + $0x8] sm:$0xff]  ;;  %v73_v24 = vld [vmem:[#allocation4 + $0x8] sm:$0xff]  ;;  %2554 = vmatprep.subr.bf16.mxu1 %v2998_v25  ;;  %v74_v27 = vld [vmem:[#allocation4 + $0x10] sm:$0xff]  ;;  %v3000_v33 = vmov 0.0   ;;  %s3001_s27 = smov 96   ;;  %vm218_vm2 = vcmask 1041409  }
  0x4b   :  { %2320 = vmatmul.mubr.msk.f32.vlgmr.msra.gmra.mrb[0].mxu0 %vm84_vm0, %v79_v2  ;;  %2560 = vmatprep.subr.bf16.mxu0 %v2998_v25  ;;  %v3120_v26 = vpack.c.bf16 %v167_v23, %v166_v22  ;;  %v168_v28 = vld [vmem:[#allocation6 + $0x10] sm:$0xff]  ;;  %v169_v29 = vld [vmem:[#allocation6 + $0x18] sm:$0xff]  ;;  %v3122_v30 = vpack.c.bf16 %v74_v27, %v73_v24  ;;  %v75_v31 = vld [vmem:[#allocation4 + $0x18] sm:$0xff]  ;;  %s3002_s28 = smov 32   ;;  %vm222_vm3 = vcmask 261120   ;;  %vm450_vm4 = vcmask 1042434  }
  0x4c   :  { %v76_v32 = vld [vmem:[#allocation4 + $0x20] sm:$0xff]  ;;  %2330 = vmatprep.mubr.msk.f32.mxu1 %vm2999_vm1, %v3000_v33  ;;  %2341 = vmatprep.mubr.msk.f32.mxu0 %vm2999_vm1, %v3000_v33  ;;  %v3129_v34 = vpack.c.bf16 %v169_v29, %v168_v28  ;;  %v3166_v62 = vld [vmem:[#allocation6 + $0x40] ss:$0 sm:$0xff]  ;;  %v171_v29 = vld [vmem:[#allocation6 + $0x28] sm:$0xff]  ;;  %vm463_vm5 = vcmask 523264   ;;  %vm704_vm6 = vcmask 1043459  }
  0x4d   :  { %2556 = vmatpush3.bf16.msra.mxu1 %v3120_v26  ;;  %2562 = vmatpush3.bf16.msra.mxu0 %v3122_v30  ;;  %v3133_v35 = vpack.c.bf16 %v76_v32, %v75_v31  ;;  %v170_v28 = vld [vmem:[#allocation6 + $0x20] sm:$0xff]  ;;  %v172_v32 = vld [vmem:[#allocation6 + $0x30] sm:$0xff]  ;;  %vm954_vm7 = vcmask 1044484   ;;  %vm1204_vm8 = vcmask 1045509   ;;  %vm1454_vm9 = vcmask 1046534  }
  0x4e   :  { %2557 = vmatprep.subr.bf16.mxu1 %v2998_v25  ;;  %2563 = vmatprep.subr.bf16.mxu0 %v2998_v25  ;;  %v3184_v31 = vpack.c.bf16 %v171_v29, %v170_v28  ;;  %vm1704_vm10 = vcmask 1047559   ;;  %vm1969_vm11 = vcmask 1040384  }
  0x51   :  { %2559 = vmatpush3.bf16.msra.mxu1 %v3129_v34  ;;  %2565 = vmatpush3.bf16.msra.mxu0 %v3133_v35 }
  0x52   :  { %2566 = vmatprep.subr.bf16.mxu1 %v2998_v25  ;;  %2578 = vmatprep.subr.bf16.mxu0 %v2998_v25 }
 0x11e   :  { %v2321_v4 = vpop.f32.mrb[0].mxu0 }
 0x11f   :  { %v3102_v5 = vadd.f32 %v2321_v4, %v2161_v3  ;;  %v157_v6 = vpop.f32.mrb[1].mxu0 }
 0x120   :  { %v3104_v7 = vadd.f32 %v2161_v3, %v157_v6 }
 0x121   :  { %2704 = vtanh.f32 %v3102_v5  ;;  %v2165_v10 = vmul.f32 -1.442695, %v3102_v5 }
 0x122   :  { %2706 = vtanh.f32 %v3104_v7  ;;  %v2164_v11 = vmul.f32 -1.442695, %v3104_v7 }
 0x123   :  { %2708 = vpow2.f32 %v2165_v10 }
 0x124   :  { %2710 = vpow2.f32 %v2164_v11 }
 0x12b   :  { %v2705_v8 = vpop.eup %2704 }
 0x12c   :  { %193 = vrot.lane.b32.xlu0 %v2705_v8, %s2997_s3  ;;  %v2707_v9 = vpop.eup %2706 }
 0x12d   :  { %v2709_v12 = vpop.eup %2708 }
 0x12e   :  { %v182_v13 = vadd.f32 1.0, %v2709_v12  ;;  %v2711_v14 = vpop.eup %2710 }
 0x12f   :  { %v181_v15 = vadd.f32 1.0, %v2711_v14 }
 0x130   :  { %191 = vrot.lane.b32.xlu0 %v2707_v9, %s2997_s3  ;;  %2712 = vrcp.f32 %v182_v13 }
 0x131   :  { %2714 = vrcp.f32 %v181_v15 }
 0x13a   :  { %v2713_v16 = vpop.eup %2712 }
 0x13b   :  { %v2715_v19 = vpop.eup %2714 }
 0x19e   :  { %v194_v17 = vpop.permute.xlu0 %193 }
 0x19f   :  { %v3112_v18 = vmul.f32 %v2713_v16, %v194_v17 }
 0x1a1   :  { %2716 = vtanh.f32 %v3112_v18  ;;  %v406_v53 = vrot.slane %v3112_v18, 7 }
 0x1a2   :  { %v192_v20 = vpop.permute.xlu0 %191 }
 0x1a3   :  { %v3115_v21 = vmul.f32 %v2715_v19, %v192_v20 }
 0x1a5   :  { %2718 = vtanh.f32 %v3115_v21  ;;  %v405_v55 = vrot.slane %v3115_v21, 7 }
 0x1ab   :  { %v2717_v36 = vpop.eup %2716 }
 0x1ac   :  { %205 = vrot.lane.b32.xlu1 %v2717_v36, %s3001_s27  ;;  %v173_v36 = vld [vmem:[#allocation6 + $0x38] sm:$0xff] }
 0x1af   :  { %v2719_v37 = vpop.eup %2718 }
 0x1b0   :  { %203 = vrot.lane.b32.xlu1 %v2719_v37, %s3001_s27  ;;  %v3188_v37 = vpack.c.bf16 %v173_v36, %v172_v32 }
 0x21e   :  { %v206_v38 = vpop.permute.xlu1 %205 }
 0x21f   :  { %v210_v39 = vmul.f32 %v2713_v16, %v206_v38 }
 0x221   :  { %v217_v41 = vrot.slane %v210_v39, 7 }
 0x222   :  { %v204_v40 = vpop.permute.xlu1 %203 }
 0x223   :  { %v209_v42 = vmul.f32 %v2715_v19, %v204_v40 }
 0x225   :  { %v219_v43 = vsel %vm218_vm2, %v217_v41, %v209_v42 }
 0x226   :  { %220 = vrot.lane.b32.xlu0 %v219_v43, %s3002_s28 }
 0x298   :  { %v221_v44 = vpop.permute.xlu0 %220 }
 0x299   :  { %2331 = vmatmul.mubr.msk.f32.vlgmr.msra.gmra.mrb[0].mxu1 %vm222_vm3, %v221_v44  ;;  %2342 = vmatmul.mubr.msk.f32.vlgmr.msra.gmra.mrb[2].mxu0 %vm222_vm3, %v221_v44 }
 0x29a   :  { %2568 = vmatpush3.bf16.msra.mxu1 %v3120_v26  ;;  %2580 = vmatpush3.bf16.msra.mxu0 %v3122_v30 }
 0x29b   :  { %2569 = vmatprep.subr.bf16.mxu1 %v2998_v25  ;;  %2581 = vmatprep.subr.bf16.mxu0 %v2998_v25 }
 0x29c   :  { %2371 = vmatprep.mubr.msk.f32.mxu0 %vm2999_vm1, %v3000_v33  ;;  %2360 = vmatprep.mubr.msk.f32.mxu1 %vm2999_vm1, %v3000_v33 }
 0x29e   :  { %2571 = vmatpush3.bf16.msra.mxu1 %v3129_v34  ;;  %2583 = vmatpush3.bf16.msra.mxu0 %v3133_v35 }
 0x29f   :  { %2572 = vmatprep.subr.bf16.mxu1 %v2998_v25  ;;  %2584 = vmatprep.subr.bf16.mxu0 %v2998_v25 }
 0x2a2   :  { %2574 = vmatpush3.bf16.msra.mxu1 %v3184_v31 }
 0x2a3   :  { %2575 = vmatprep.subr.bf16.mxu1 %v2998_v25 }
 0x2a6   :  { %2577 = vmatpush3.bf16.msra.mxu1 %v3188_v37 }
 0x2a7   :  { %2596 = vmatprep.subr.bf16.mxu1 %v2998_v25 }
 0x36c   :  { %v291_v45 = vpop.f32.mrb[0].mxu1  ;;  %v379_v46 = vpop.f32.mrb[2].mxu0 }
 0x36d   :  { %v384_v47 = vrot.slane %v379_v46, 7  ;;  %v388_v48 = vadd.f32 %v379_v46, %v3102_v5  ;;  %v2332_v49 = vpop.f32.mrb[1].mxu1  ;;  %v2343_v50 = vpop.f32.mrb[3].mxu0  ;;  %v292_v63 = vadd.f32 %v3166_v62, %v291_v45 }
 0x36f   :  { %v387_v51 = vadd.f32 %v384_v47, %v3104_v7  ;;  %2720 = vtanh.f32 %v388_v48  ;;  %v2171_v56 = vmul.f32 -1.442695, %v388_v48  ;;  %v2168_v9 = vmul.f32 -1.442695, %v292_v63 }
 0x371   :  { %2722 = vtanh.f32 %v387_v51  ;;  %v2170_v57 = vmul.f32 -1.442695, %v387_v51 }
 0x372   :  { %2724 = vpow2.f32 %v2171_v56 }
 0x373   :  { %2726 = vpow2.f32 %v2170_v57 }
 0x379   :  { %v2721_v52 = vpop.eup %2720 }
 0x37a   :  { %419 = vrot.lane.b32.xlu0 %v2721_v52, %s2997_s3 }
 0x37b   :  { %v2723_v54 = vpop.eup %2722 }
 0x37c   :  { %417 = vrot.lane.b32.xlu1 %v2723_v54, %s2997_s3  ;;  %v2725_v58 = vpop.eup %2724 }
 0x37d   :  { %v396_v59 = vadd.f32 1.0, %v2725_v58  ;;  %v2727_v60 = vpop.eup %2726 }
 0x37e   :  { %409 = vrot.lane.b32.xlu0 %v406_v53, %s3002_s28  ;;  %v395_v61 = vadd.f32 1.0, %v2727_v60 }
 0x37f   :  { %2728 = vrcp.f32 %v396_v59 }
 0x380   :  { %407 = vrot.lane.b32.xlu1 %v405_v55, %s3002_s28  ;;  %2730 = vrcp.f32 %v395_v61 }
 0x381   :  { %2732 = vtanh.f32 %v292_v63 }
 0x382   :  { %2734 = vpow2.f32 %v2168_v9 }
 0x389   :  { %v2729_v0 = vpop.eup %2728 }
 0x38a   :  { %v2731_v3 = vpop.eup %2730 }
 0x38b   :  { %v2733_v8 = vpop.eup %2732 }
 0x38c   :  { %v2735_v10 = vpop.eup %2734 }
 0x38d   :  { %v298_v11 = vadd.f32 1.0, %v2735_v10 }
 0x38f   :  { %2736 = vrcp.f32 %v298_v11 }
 0x399   :  { %v2737_v20 = vpop.eup %2736 }
 0x3ec   :  { %v420_v1 = vpop.permute.xlu0 %419 }
 0x3ed   :  { %v424_v2 = vmul.f32 %v2729_v0, %v420_v1 }
 0x3ee   :  { %v418_v4 = vpop.permute.xlu1 %417 }
 0x3ef   :  { %429 = vrot.lane.b32.xlu0 %v424_v2, %s3002_s28  ;;  %v423_v6 = vmul.f32 %v2731_v3, %v418_v4 }
 0x3f0   :  { %v410_v12 = vpop.permute.xlu0 %409 }
 0x3f1   :  { %427 = vrot.lane.b32.xlu1 %v423_v6, %s3002_s28  ;;  %v414_v13 = vmul.f32 %v2729_v0, %v410_v12 }
 0x3f2   :  { %v408_v14 = vpop.permute.xlu1 %407 }
 0x3f3   :  { %v413_v17 = vmul.f32 %v2731_v3, %v408_v14 }
 0x3f5   :  { %303 = vrot.lane.b32.xlu1 %v2733_v8, %s2997_s3 }
 0x461   :  { %v430_v15 = vpop.permute.xlu0 %429 }
 0x462   :  { %v3172_v16 = vadd.f32 %v430_v15, %v414_v13 }
 0x463   :  { %v428_v18 = vpop.permute.xlu1 %427 }
 0x464   :  { %2738 = vtanh.f32 %v3172_v16  ;;  %v3175_v19 = vadd.f32 %v428_v18, %v413_v17  ;;  %v664_v29 = vrot.slane %v3172_v16, 7 }
 0x466   :  { %2740 = vtanh.f32 %v3175_v19 }
 0x467   :  { %v304_v21 = vpop.permute.xlu1 %303 }
 0x468   :  { %v3178_v22 = vmul.f32 %v2737_v20, %v304_v21 }
 0x46a   :  { %2742 = vtanh.f32 %v3178_v22 }
 0x46e   :  { %v2739_v23 = vpop.eup %2738 }
 0x46f   :  { %441 = vrot.lane.b32.xlu1 %v2739_v23, %s2997_s3 }
 0x470   :  { %v2741_v24 = vpop.eup %2740 }
 0x471   :  { %439 = vrot.lane.b32.xlu0 %v2741_v24, %s2997_s3 }
 0x474   :  { %v2743_v27 = vpop.eup %2742 }
 0x475   :  { %309 = vrot.lane.b32.xlu0 %v2743_v27, %s3001_s27  ;;  %v663_v27 = vrot.slane %v3175_v19, 7 }
 0x4e1   :  { %v442_v38 = vpop.permute.xlu1 %441 }
 0x4e2   :  { %v446_v39 = vmul.f32 %v2729_v0, %v442_v38 }
 0x4e3   :  { %v440_v41 = vpop.permute.xlu0 %439 }
 0x4e4   :  { %v449_v40 = vrot.slane %v446_v39, 7  ;;  %v445_v42 = vmul.f32 %v2731_v3, %v440_v41 }
 0x4e6   :  { %v564_v43 = vrot.slane %v445_v42, 1  ;;  %v451_v44 = vsel %vm450_vm4, %v449_v40, %v445_v42 }
 0x4e7   :  { %452 = vrot.lane.b32.xlu1 %v451_v44, %s3002_s28  ;;  %v310_v45 = vpop.permute.xlu0 %309 }
 0x4e8   :  { %v312_v46 = vmul.f32 %v2737_v20, %v310_v45  ;;  %v565_v48 = vsel %vm218_vm2, %v446_v39, %v564_v43 }
 0x4ea   :  { %v456_v47 = vrot.slane %v312_v46, 7 }
 0x4eb   :  { %566 = vrot.lane.b32.xlu1 %v565_v48, %s3002_s28 }
 0x4ec   :  { %457 = vrot.lane.b32.xlu0 %v456_v47, %s2997_s3 }
 0x559   :  { %v453_v49 = vpop.permute.xlu1 %452 }
 0x55d   :  { %v567_v50 = vpop.permute.xlu1 %566 }
 0x55e   :  { %2372 = vmatmul.mubr.msk.f32.vlgmr.msra.gmra.mrb[4].mxu0 %vm222_vm3, %v567_v50  ;;  %v458_v51 = vpop.permute.xlu0 %457 }
 0x55f   :  { %v460_v52 = vsel %vm222_vm3, %v453_v49, %v458_v51  ;;  %2586 = vmatpush3.bf16.msra.mxu0 %v3120_v26  ;;  %2390 = vmatprep.mubr.msk.f32.mxu0 %vm2999_vm1, %v3000_v33 }
 0x560   :  { %v462_v53 = vrot.slane %v460_v52, 1  ;;  %2587 = vmatprep.subr.bf16.mxu0 %v2998_v25 }
 0x562   :  { %2361 = vmatmul.mubr.msk.f32.vlgmr.msra.gmra.mrb[2].mxu1 %vm463_vm5, %v462_v53 }
 0x563   :  { %2589 = vmatpush3.bf16.msra.mxu0 %v3129_v34  ;;  %2598 = vmatpush3.bf16.msra.mxu1 %v3122_v30 }
 0x564   :  { %2590 = vmatprep.subr.bf16.mxu0 %v2998_v25  ;;  %2599 = vmatprep.subr.bf16.mxu1 %v2998_v25 }
 0x565   :  { %2401 = vmatprep.mubr.msk.f32.mxu1 %vm2999_vm1, %v3000_v33 }
 0x567   :  { %2592 = vmatpush3.bf16.msra.mxu0 %v3184_v31  ;;  %2601 = vmatpush3.bf16.msra.mxu1 %v3133_v35 }
 0x568   :  { %2593 = vmatprep.subr.bf16.mxu0 %v2998_v25  ;;  %2602 = vmatprep.subr.bf16.mxu1 %v2998_v25 }
 0x56b   :  { %2595 = vmatpush3.bf16.msra.mxu0 %v3188_v37 }
 0x56c   :  { %2614 = vmatprep.subr.bf16.mxu0 %v2998_v25 }
 0x631   :  { %v636_v54 = vpop.f32.mrb[4].mxu0 }
 0x632   :  { %v641_v55 = vrot.slane %v636_v54, 6  ;;  %v642_v56 = vrot.slane %v636_v54, 7  ;;  %v2373_v57 = vpop.f32.mrb[5].mxu0 }
 0x634   :  { %v645_v58 = vadd.f32 %v641_v55, %v3104_v7  ;;  %v646_v59 = vadd.f32 %v642_v56, %v3102_v5 }
 0x635   :  { %v532_v60 = vpop.f32.mrb[2].mxu1 }
 0x636   :  { %2744 = vtanh.f32 %v645_v58  ;;  %v2362_v61 = vpop.f32.mrb[3].mxu1  ;;  %v533_v63 = vadd.f32 %v3166_v62, %v532_v60  ;;  %v2175_v3 = vmul.f32 -1.442695, %v645_v58  ;;  %v2176_v4 = vmul.f32 -1.442695, %v646_v59 }
 0x637   :  { %2746 = vtanh.f32 %v646_v59 }
 0x638   :  { %2748 = vtanh.f32 %v533_v63  ;;  %v2173_v6 = vmul.f32 -1.442695, %v533_v63 }
 0x639   :  { %2750 = vpow2.f32 %v2175_v3 }
 0x63a   :  { %2752 = vpow2.f32 %v2176_v4 }
 0x63b   :  { %2754 = vpow2.f32 %v2173_v6 }
 0x640   :  { %v2745_v0 = vpop.eup %2744 }
 0x641   :  { %v2747_v1 = vpop.eup %2746  ;;  %671 = vrot.lane.b32.xlu0 %v2745_v0, %s2997_s3 }
 0x642   :  { %673 = vrot.lane.b32.xlu1 %v2747_v1, %s2997_s3  ;;  %v2749_v2 = vpop.eup %2748 }
 0x643   :  { %v2751_v8 = vpop.eup %2750 }
 0x644   :  { %v2753_v9 = vpop.eup %2752  ;;  %v653_v10 = vadd.f32 1.0, %v2751_v8 }
 0x645   :  { %549 = vrot.lane.b32.xlu0 %v2749_v2, %s2997_s3  ;;  %v654_v11 = vadd.f32 1.0, %v2753_v9  ;;  %v2755_v12 = vpop.eup %2754 }
 0x646   :  { %544 = vrot.lane.b32.xlu1 %v3178_v22, %s3002_s28  ;;  %2756 = vrcp.f32 %v653_v10  ;;  %v539_v13 = vadd.f32 1.0, %v2755_v12 }
 0x647   :  { %2758 = vrcp.f32 %v654_v11 }
 0x648   :  { %2760 = vrcp.f32 %v539_v13 }
 0x650   :  { %v2757_v14 = vpop.eup %2756 }
 0x651   :  { %v2759_v17 = vpop.eup %2758  ;;  %v667_v32 = vmul.f32 %v2757_v14, %v663_v27 }
 0x652   :  { %v2761_v22 = vpop.eup %2760  ;;  %v668_v36 = vmul.f32 %v2759_v17, %v664_v29 }
 0x6b3   :  { %v672_v15 = vpop.permute.xlu0 %671 }
 0x6b4   :  { %v674_v18 = vpop.permute.xlu1 %673  ;;  %v677_v20 = vmul.f32 %v2757_v14, %v672_v15 }
 0x6b5   :  { %v678_v21 = vmul.f32 %v2759_v17, %v674_v18 }
 0x6b6   :  { %681 = vrot.lane.b32.xlu0 %v677_v20, %s3002_s28 }
 0x6b7   :  { %683 = vrot.lane.b32.xlu1 %v678_v21, %s3002_s28  ;;  %v550_v23 = vpop.permute.xlu0 %549 }
 0x6b8   :  { %v552_v24 = vmul.f32 %v2761_v22, %v550_v23  ;;  %v545_v28 = vpop.permute.xlu1 %544 }
 0x6b9   :  { %v547_v42 = vmul.f32 %v2761_v22, %v545_v28 }
 0x6ba   :  { %554 = vrot.lane.b32.xlu0 %v552_v24, %s3002_s28 }
 0x728   :  { %v682_v38 = vpop.permute.xlu0 %681 }
 0x729   :  { %v684_v39 = vpop.permute.xlu1 %683  ;;  %v3228_v40 = vadd.f32 %v682_v38, %v667_v32 }
 0x72a   :  { %v3230_v41 = vadd.f32 %v684_v39, %v668_v36 }
 0x72b   :  { %2762 = vtanh.f32 %v3228_v40 }
 0x72c   :  { %2764 = vtanh.f32 %v3230_v41  ;;  %v555_v43 = vpop.permute.xlu0 %554 }
 0x72d   :  { %v3234_v44 = vadd.f32 %v555_v43, %v547_v42 }
 0x72f   :  { %2766 = vtanh.f32 %v3234_v44 }
 0x735   :  { %v2763_v19 = vpop.eup %2762 }
 0x736   :  { %v2765_v16 = vpop.eup %2764  ;;  %693 = vrot.lane.b32.xlu1 %v2763_v19, %s2997_s3  ;;  %v913_v19 = vrot.slane %v3228_v40, 7 }
 0x737   :  { %695 = vrot.lane.b32.xlu0 %v2765_v16, %s2997_s3  ;;  %v914_v16 = vrot.slane %v3230_v41, 7 }
 0x739   :  { %v2767_v45 = vpop.eup %2766 }
 0x73a   :  { %560 = vrot.lane.b32.xlu1 %v2767_v45, %s2997_s3 }
 0x7a8   :  { %v694_v46 = vpop.permute.xlu1 %693 }
 0x7a9   :  { %v696_v47 = vpop.permute.xlu0 %695  ;;  %v699_v48 = vmul.f32 %v2757_v14, %v694_v46 }
 0x7aa   :  { %v700_v49 = vmul.f32 %v2759_v17, %v696_v47 }
 0x7ab   :  { %v813_v52 = vrot.slane %v699_v48, 2 }
 0x7ac   :  { %v703_v50 = vrot.slane %v700_v49, 7  ;;  %v561_v51 = vpop.permute.xlu1 %560  ;;  %v814_v53 = vrot.slane %v700_v49, 1 }
 0x7ad   :  { %v563_v54 = vmul.f32 %v2761_v22, %v561_v51 }
 0x7ae   :  { %v705_v55 = vsel %vm704_vm6, %v703_v50, %v699_v48  ;;  %v815_v57 = vsel %vm218_vm2, %v814_v53, %v813_v52 }
 0x7af   :  { %706 = vrot.lane.b32.xlu0 %v705_v55, %s3002_s28  ;;  %v710_v56 = vrot.slane %v563_v54, 6 }
 0x7b1   :  { %711 = vrot.lane.b32.xlu1 %v710_v56, %s2997_s3 }
 0x7b3   :  { %816 = vrot.lane.b32.xlu0 %v815_v57, %s3002_s28 }
 0x821   :  { %v707_v58 = vpop.permute.xlu0 %706 }
 0x823   :  { %v712_v59 = vpop.permute.xlu1 %711 }
 0x824   :  { %v714_v60 = vsel %vm222_vm3, %v707_v58, %v712_v59 }
 0x825   :  { %v817_v61 = vpop.permute.xlu0 %816  ;;  %v716_v63 = vrot.slane %v714_v60, 2 }
 0x826   :  { %2402 = vmatmul.mubr.msk.f32.vlgmr.msra.gmra.mrb[4].mxu1 %vm222_vm3, %v817_v61 }
 0x827   :  { %2604 = vmatpush3.bf16.msra.mxu1 %v3120_v26  ;;  %2420 = vmatprep.mubr.msk.f32.mxu1 %vm2999_vm1, %v3000_v33 }
 0x828   :  { %2391 = vmatmul.mubr.msk.f32.vlgmr.msra.gmra.mrb[6].mxu0 %vm463_vm5, %v716_v63  ;;  %2605 = vmatprep.subr.bf16.mxu1 %v2998_v25 }
 0x829   :  { %2616 = vmatpush3.bf16.msra.mxu0 %v3122_v30  ;;  %2431 = vmatprep.mubr.msk.f32.mxu0 %vm2999_vm1, %v3000_v33 }
 0x82a   :  { %2617 = vmatprep.subr.bf16.mxu0 %v2998_v25 }
 0x82b   :  { %2607 = vmatpush3.bf16.msra.mxu1 %v3129_v34 }
 0x82c   :  { %2608 = vmatprep.subr.bf16.mxu1 %v2998_v25 }
 0x82d   :  { %2619 = vmatpush3.bf16.msra.mxu0 %v3133_v35 }
 0x82e   :  { %2620 = vmatprep.subr.bf16.mxu0 %v2998_v25 }
 0x82f   :  { %2610 = vmatpush3.bf16.msra.mxu1 %v3184_v31 }
 0x830   :  { %2611 = vmatprep.subr.bf16.mxu1 %v2998_v25 }
 0x833   :  { %2613 = vmatpush3.bf16.msra.mxu1 %v3188_v37 }
 0x834   :  { %2632 = vmatprep.subr.bf16.mxu1 %v2998_v25 }
 0x8f9   :  { %v886_v0 = vpop.f32.mrb[4].mxu1 }
 0x8fa   :  { %v891_v1 = vrot.slane %v886_v0, 5  ;;  %v892_v2 = vrot.slane %v886_v0, 6  ;;  %v2403_v3 = vpop.f32.mrb[5].mxu1 }
 0x8fb   :  { %v785_v4 = vpop.f32.mrb[6].mxu0 }
 0x8fc   :  { %v895_v6 = vadd.f32 %v891_v1, %v3104_v7  ;;  %v896_v8 = vadd.f32 %v892_v2, %v3102_v5  ;;  %v2392_v9 = vpop.f32.mrb[7].mxu0  ;;  %v786_v10 = vadd.f32 %v3166_v62, %v785_v4 }
 0x8fe   :  { %2768 = vtanh.f32 %v895_v6  ;;  %v2180_v14 = vmul.f32 -1.442695, %v895_v6  ;;  %v2181_v15 = vmul.f32 -1.442695, %v896_v8  ;;  %v2178_v17 = vmul.f32 -1.442695, %v786_v10 }
 0x8ff   :  { %2770 = vtanh.f32 %v896_v8 }
 0x900   :  { %2772 = vtanh.f32 %v786_v10 }
 0x901   :  { %2774 = vpow2.f32 %v2180_v14 }
 0x902   :  { %2776 = vpow2.f32 %v2181_v15 }
 0x903   :  { %2778 = vpow2.f32 %v2178_v17 }
 0x908   :  { %v2769_v11 = vpop.eup %2768 }
 0x909   :  { %v2771_v12 = vpop.eup %2770  ;;  %921 = vrot.lane.b32.xlu1 %v2769_v11, %s2997_s3 }
 0x90a   :  { %923 = vrot.lane.b32.xlu0 %v2771_v12, %s2997_s3  ;;  %v2773_v13 = vpop.eup %2772 }
 0x90b   :  { %v2775_v18 = vpop.eup %2774 }
 0x90c   :  { %v2777_v20 = vpop.eup %2776  ;;  %v903_v21 = vadd.f32 1.0, %v2775_v18 }
 0x90d   :  { %798 = vrot.lane.b32.xlu1 %v2773_v13, %s2997_s3  ;;  %v904_v22 = vadd.f32 1.0, %v2777_v20  ;;  %v2779_v23 = vpop.eup %2778 }
 0x90e   :  { %2780 = vrcp.f32 %v903_v21  ;;  %v792_v24 = vadd.f32 1.0, %v2779_v23 }
 0x90f   :  { %2782 = vrcp.f32 %v904_v22 }
 0x910   :  { %2784 = vrcp.f32 %v792_v24 }
 0x918   :  { %v2781_v27 = vpop.eup %2780 }
 0x919   :  { %v2783_v29 = vpop.eup %2782  ;;  %v917_v45 = vmul.f32 %v2781_v27, %v913_v19 }
 0x91a   :  { %v2785_v39 = vpop.eup %2784  ;;  %v918_v46 = vmul.f32 %v2783_v29, %v914_v16 }
 0x91b   :  { %v796_v51 = vmul.f32 %v2785_v39, %v3234_v44 }
 0x97b   :  { %v922_v28 = vpop.permute.xlu1 %921 }
 0x97c   :  { %v924_v32 = vpop.permute.xlu0 %923  ;;  %v927_v36 = vmul.f32 %v2781_v27, %v922_v28 }
 0x97d   :  { %v928_v38 = vmul.f32 %v2783_v29, %v924_v32 }
 0x97e   :  { %931 = vrot.lane.b32.xlu0 %v927_v36, %s3002_s28 }
 0x97f   :  { %933 = vrot.lane.b32.xlu1 %v928_v38, %s3002_s28  ;;  %v799_v42 = vpop.permute.xlu1 %798 }
 0x980   :  { %v801_v43 = vmul.f32 %v2785_v39, %v799_v42 }
 0x982   :  { %803 = vrot.lane.b32.xlu0 %v801_v43, %s3002_s28 }
 0x9f0   :  { %v932_v47 = vpop.permute.xlu0 %931 }
 0x9f1   :  { %v934_v48 = vpop.permute.xlu1 %933  ;;  %v3274_v49 = vadd.f32 %v932_v47, %v917_v45 }
 0x9f2   :  { %v3276_v50 = vadd.f32 %v934_v48, %v918_v46 }
 0x9f3   :  { %2786 = vtanh.f32 %v3274_v49 }
 0x9f4   :  { %2788 = vtanh.f32 %v3276_v50  ;;  %v804_v52 = vpop.permute.xlu0 %803 }
 0x9f5   :  { %v3281_v53 = vadd.f32 %v804_v52, %v796_v51 }
 0x9f7   :  { %2790 = vtanh.f32 %v3281_v53 }
 0x9fd   :  { %v2787_v40 = vpop.eup %2786 }
 0x9fe   :  { %v2789_v41 = vpop.eup %2788  ;;  %943 = vrot.lane.b32.xlu1 %v2787_v40, %s2997_s3  ;;  %v1163_v40 = vrot.slane %v3274_v49, 7 }
 0x9ff   :  { %945 = vrot.lane.b32.xlu0 %v2789_v41, %s2997_s3  ;;  %v1164_v41 = vrot.slane %v3276_v50, 7 }
 0xa01   :  { %v2791_v54 = vpop.eup %2790 }
 0xa02   :  { %809 = vrot.lane.b32.xlu1 %v2791_v54, %s2997_s3 }
 0xa70   :  { %v944_v55 = vpop.permute.xlu1 %943 }
 0xa71   :  { %v946_v56 = vpop.permute.xlu0 %945  ;;  %v949_v58 = vmul.f32 %v2781_v27, %v944_v55 }
 0xa72   :  { %v950_v57 = vmul.f32 %v2783_v29, %v946_v56 }
 0xa73   :  { %v1063_v61 = vrot.slane %v949_v58, 3 }
 0xa74   :  { %v953_v44 = vrot.slane %v950_v57, 7  ;;  %v810_v59 = vpop.permute.xlu1 %809  ;;  %v1064_v60 = vrot.slane %v950_v57, 2 }
 0xa75   :  { %v812_v63 = vmul.f32 %v2785_v39, %v810_v59 }
 0xa76   :  { %v955_v0 = vsel %vm954_vm7, %v953_v44, %v949_v58  ;;  %v1065_v2 = vsel %vm218_vm2, %v1064_v60, %v1063_v61 }
 0xa77   :  { %956 = vrot.lane.b32.xlu0 %v955_v0, %s3002_s28  ;;  %v960_v1 = vrot.slane %v812_v63, 5 }
 0xa79   :  { %961 = vrot.lane.b32.xlu1 %v960_v1, %s2997_s3 }
 0xa7b   :  { %1066 = vrot.lane.b32.xlu0 %v1065_v2, %s3002_s28 }
 0xae9   :  { %v957_v3 = vpop.permute.xlu0 %956 }
 0xaeb   :  { %v962_v4 = vpop.permute.xlu1 %961 }
 0xaec   :  { %v964_v6 = vsel %vm222_vm3, %v957_v3, %v962_v4 }
 0xaed   :  { %v1067_v8 = vpop.permute.xlu0 %1066  ;;  %v966_v9 = vrot.slane %v964_v6, 3 }
 0xaee   :  { %2432 = vmatmul.mubr.msk.f32.vlgmr.msra.gmra.mrb[8].mxu0 %vm222_vm3, %v1067_v8 }
 0xaef   :  { %2622 = vmatpush3.bf16.msra.mxu0 %v3120_v26  ;;  %2450 = vmatprep.mubr.msk.f32.mxu0 %vm2999_vm1, %v3000_v33 }
 0xaf0   :  { %2421 = vmatmul.mubr.msk.f32.vlgmr.msra.gmra.mrb[6].mxu1 %vm463_vm5, %v966_v9  ;;  %2623 = vmatprep.subr.bf16.mxu0 %v2998_v25 }
 0xaf1   :  { %2634 = vmatpush3.bf16.msra.mxu1 %v3122_v30  ;;  %2461 = vmatprep.mubr.msk.f32.mxu1 %vm2999_vm1, %v3000_v33 }
 0xaf2   :  { %2635 = vmatprep.subr.bf16.mxu1 %v2998_v25 }
 0xaf3   :  { %2625 = vmatpush3.bf16.msra.mxu0 %v3129_v34 }
 0xaf4   :  { %2626 = vmatprep.subr.bf16.mxu0 %v2998_v25 }
 0xaf5   :  { %2637 = vmatpush3.bf16.msra.mxu1 %v3133_v35 }
 0xaf6   :  { %2638 = vmatprep.subr.bf16.mxu1 %v2998_v25 }
 0xaf7   :  { %2628 = vmatpush3.bf16.msra.mxu0 %v3184_v31 }
 0xaf8   :  { %2629 = vmatprep.subr.bf16.mxu0 %v2998_v25 }
 0xafb   :  { %2631 = vmatpush3.bf16.msra.mxu0 %v3188_v37 }
 0xafc   :  { %2650 = vmatprep.subr.bf16.mxu0 %v2998_v25 }
 0xbc1   :  { %v1136_v10 = vpop.f32.mrb[8].mxu0 }
 0xbc2   :  { %v1141_v11 = vrot.slane %v1136_v10, 4  ;;  %v1142_v12 = vrot.slane %v1136_v10, 5  ;;  %v2433_v13 = vpop.f32.mrb[9].mxu0 }
 0xbc3   :  { %v1035_v14 = vpop.f32.mrb[6].mxu1 }
 0xbc4   :  { %v1145_v15 = vadd.f32 %v1141_v11, %v3104_v7  ;;  %v1146_v17 = vadd.f32 %v1142_v12, %v3102_v5  ;;  %v2422_v18 = vpop.f32.mrb[7].mxu1  ;;  %v1036_v20 = vadd.f32 %v3166_v62, %v1035_v14 }
 0xbc6   :  { %2792 = vtanh.f32 %v1145_v15  ;;  %v2185_v24 = vmul.f32 -1.442695, %v1145_v15  ;;  %v2186_v27 = vmul.f32 -1.442695, %v1146_v17  ;;  %v2183_v28 = vmul.f32 -1.442695, %v1036_v20 }
 0xbc7   :  { %2794 = vtanh.f32 %v1146_v17 }
 0xbc8   :  { %2796 = vtanh.f32 %v1036_v20 }
 0xbc9   :  { %2798 = vpow2.f32 %v2185_v24 }
 0xbca   :  { %2800 = vpow2.f32 %v2186_v27 }
 0xbcb   :  { %2802 = vpow2.f32 %v2183_v28 }
 0xbd0   :  { %v2793_v21 = vpop.eup %2792 }
 0xbd1   :  { %v2795_v22 = vpop.eup %2794  ;;  %1171 = vrot.lane.b32.xlu1 %v2793_v21, %s2997_s3 }
 0xbd2   :  { %1173 = vrot.lane.b32.xlu0 %v2795_v22, %s2997_s3  ;;  %v2797_v23 = vpop.eup %2796 }
 0xbd3   :  { %v2799_v29 = vpop.eup %2798 }
 0xbd4   :  { %v2801_v32 = vpop.eup %2800  ;;  %v1153_v36 = vadd.f32 1.0, %v2799_v29 }
 0xbd5   :  { %1048 = vrot.lane.b32.xlu1 %v2797_v23, %s2997_s3  ;;  %v1154_v38 = vadd.f32 1.0, %v2801_v32  ;;  %v2803_v39 = vpop.eup %2802 }
 0xbd6   :  { %2804 = vrcp.f32 %v1153_v36  ;;  %v1042_v42 = vadd.f32 1.0, %v2803_v39 }
 0xbd7   :  { %2806 = vrcp.f32 %v1154_v38 }
 0xbd8   :  { %2808 = vrcp.f32 %v1042_v42 }
 0xbe0   :  { %v2805_v43 = vpop.eup %2804 }
 0xbe1   :  { %v2807_v16 = vpop.eup %2806  ;;  %v1167_v54 = vmul.f32 %v2805_v43, %v1163_v40 }
 0xbe2   :  { %v2809_v48 = vpop.eup %2808  ;;  %v1168_v56 = vmul.f32 %v2807_v16, %v1164_v41 }
 0xbe3   :  { %v1046_v59 = vmul.f32 %v2809_v48, %v3281_v53 }
 0xc43   :  { %v1172_v19 = vpop.permute.xlu1 %1171 }
 0xc44   :  { %v1174_v45 = vpop.permute.xlu0 %1173  ;;  %v1177_v46 = vmul.f32 %v2805_v43, %v1172_v19 }
 0xc45   :  { %v1178_v47 = vmul.f32 %v2807_v16, %v1174_v45 }
 0xc46   :  { %1181 = vrot.lane.b32.xlu0 %v1177_v46, %s3002_s28 }
 0xc47   :  { %1183 = vrot.lane.b32.xlu1 %v1178_v47, %s3002_s28  ;;  %v1049_v51 = vpop.permute.xlu1 %1048 }
 0xc48   :  { %v1051_v52 = vmul.f32 %v2809_v48, %v1049_v51 }
 0xc4a   :  { %1053 = vrot.lane.b32.xlu0 %v1051_v52, %s3002_s28 }
 0xcb8   :  { %v1182_v55 = vpop.permute.xlu0 %1181 }
 0xcb9   :  { %v3321_v57 = vadd.f32 %v1182_v55, %v1167_v54  ;;  %v1184_v58 = vpop.permute.xlu1 %1183 }
 0xcba   :  { %v3323_v44 = vadd.f32 %v1184_v58, %v1168_v56 }
 0xcbb   :  { %2810 = vtanh.f32 %v3321_v57 }
 0xcbc   :  { %2812 = vtanh.f32 %v3323_v44  ;;  %v1054_v60 = vpop.permute.xlu0 %1053 }
 0xcbd   :  { %v3328_v61 = vadd.f32 %v1054_v60, %v1046_v59 }
 0xcbf   :  { %2814 = vtanh.f32 %v3328_v61 }
 0xcc5   :  { %v2811_v49 = vpop.eup %2810 }
 0xcc6   :  { %v2813_v50 = vpop.eup %2812  ;;  %1193 = vrot.lane.b32.xlu1 %v2811_v49, %s2997_s3  ;;  %v1413_v49 = vrot.slane %v3321_v57, 7 }
 0xcc7   :  { %1195 = vrot.lane.b32.xlu0 %v2813_v50, %s2997_s3  ;;  %v1414_v50 = vrot.slane %v3323_v44, 7 }
 0xcc9   :  { %v2815_v63 = vpop.eup %2814 }
 0xcca   :  { %1059 = vrot.lane.b32.xlu1 %v2815_v63, %s2997_s3 }
 0xd38   :  { %v1194_v0 = vpop.permute.xlu1 %1193 }
 0xd39   :  { %v1196_v1 = vpop.permute.xlu0 %1195  ;;  %v1199_v2 = vmul.f32 %v2805_v43, %v1194_v0 }
 0xd3a   :  { %v1200_v3 = vmul.f32 %v2807_v16, %v1196_v1 }
 0xd3b   :  { %v1313_v6 = vrot.slane %v1199_v2, 4 }
 0xd3c   :  { %v1203_v53 = vrot.slane %v1200_v3, 7  ;;  %v1060_v4 = vpop.permute.xlu1 %1059  ;;  %v1314_v8 = vrot.slane %v1200_v3, 3 }
 0xd3d   :  { %v1062_v9 = vmul.f32 %v2809_v48, %v1060_v4 }
 0xd3e   :  { %v1205_v10 = vsel %vm1204_vm8, %v1203_v53, %v1199_v2  ;;  %v1315_v12 = vsel %vm218_vm2, %v1314_v8, %v1313_v6 }
 0xd3f   :  { %1206 = vrot.lane.b32.xlu0 %v1205_v10, %s3002_s28  ;;  %v1210_v11 = vrot.slane %v1062_v9, 4 }
 0xd41   :  { %1211 = vrot.lane.b32.xlu1 %v1210_v11, %s2997_s3 }
 0xd43   :  { %1316 = vrot.lane.b32.xlu0 %v1315_v12, %s3002_s28 }
 0xdb1   :  { %v1207_v13 = vpop.permute.xlu0 %1206 }
 0xdb3   :  { %v1212_v14 = vpop.permute.xlu1 %1211 }
 0xdb4   :  { %v1214_v15 = vsel %vm222_vm3, %v1207_v13, %v1212_v14 }
 0xdb5   :  { %v1317_v17 = vpop.permute.xlu0 %1316  ;;  %v1216_v18 = vrot.slane %v1214_v15, 4 }
 0xdb6   :  { %2462 = vmatmul.mubr.msk.f32.vlgmr.msra.gmra.mrb[8].mxu1 %vm222_vm3, %v1317_v17 }
 0xdb7   :  { %2640 = vmatpush3.bf16.msra.mxu1 %v3120_v26  ;;  %2480 = vmatprep.mubr.msk.f32.mxu1 %vm2999_vm1, %v3000_v33 }
 0xdb8   :  { %2451 = vmatmul.mubr.msk.f32.vlgmr.msra.gmra.mrb[10].mxu0 %vm463_vm5, %v1216_v18  ;;  %2641 = vmatprep.subr.bf16.mxu1 %v2998_v25 }
 0xdb9   :  { %2652 = vmatpush3.bf16.msra.mxu0 %v3122_v30  ;;  %2491 = vmatprep.mubr.msk.f32.mxu0 %vm2999_vm1, %v3000_v33 }
 0xdba   :  { %2653 = vmatprep.subr.bf16.mxu0 %v2998_v25 }
 0xdbb   :  { %2643 = vmatpush3.bf16.msra.mxu1 %v3129_v34 }
 0xdbc   :  { %2644 = vmatprep.subr.bf16.mxu1 %v2998_v25 }
 0xdbd   :  { %2655 = vmatpush3.bf16.msra.mxu0 %v3133_v35 }
 0xdbe   :  { %2656 = vmatprep.subr.bf16.mxu0 %v2998_v25 }
 0xdbf   :  { %2646 = vmatpush3.bf16.msra.mxu1 %v3184_v31 }
 0xdc0   :  { %2647 = vmatprep.subr.bf16.mxu1 %v2998_v25 }
 0xdc3   :  { %2649 = vmatpush3.bf16.msra.mxu1 %v3188_v37 }
 0xdc4   :  { %2668 = vmatprep.subr.bf16.mxu1 %v2998_v25 }
 0xe89   :  { %v1386_v20 = vpop.f32.mrb[8].mxu1 }
 0xe8a   :  { %v1391_v21 = vrot.slane %v1386_v20, 3  ;;  %v1392_v22 = vrot.slane %v1386_v20, 4  ;;  %v2463_v23 = vpop.f32.mrb[9].mxu1 }
 0xe8b   :  { %v1285_v24 = vpop.f32.mrb[10].mxu0 }
 0xe8c   :  { %v1395_v27 = vadd.f32 %v1391_v21, %v3104_v7  ;;  %v1396_v28 = vadd.f32 %v1392_v22, %v3102_v5  ;;  %v2452_v29 = vpop.f32.mrb[11].mxu0  ;;  %v1286_v32 = vadd.f32 %v3166_v62, %v1285_v24 }
 0xe8e   :  { %2816 = vtanh.f32 %v1395_v27  ;;  %v2190_v42 = vmul.f32 -1.442695, %v1395_v27  ;;  %v2191_v43 = vmul.f32 -1.442695, %v1396_v28  ;;  %v2188_v19 = vmul.f32 -1.442695, %v1286_v32 }
 0xe8f   :  { %2818 = vtanh.f32 %v1396_v28 }
 0xe90   :  { %2820 = vtanh.f32 %v1286_v32 }
 0xe91   :  { %2822 = vpow2.f32 %v2190_v42 }
 0xe92   :  { %2824 = vpow2.f32 %v2191_v43 }
 0xe93   :  { %2826 = vpow2.f32 %v2188_v19 }
 0xe98   :  { %v2817_v36 = vpop.eup %2816 }
 0xe99   :  { %v2819_v38 = vpop.eup %2818  ;;  %1421 = vrot.lane.b32.xlu1 %v2817_v36, %s2997_s3 }
 0xe9a   :  { %1423 = vrot.lane.b32.xlu0 %v2819_v38, %s2997_s3  ;;  %v2821_v39 = vpop.eup %2820 }
 0xe9b   :  { %v2823_v16 = vpop.eup %2822 }
 0xe9c   :  { %v2825_v45 = vpop.eup %2824  ;;  %v1403_v46 = vadd.f32 1.0, %v2823_v16 }
 0xe9d   :  { %1298 = vrot.lane.b32.xlu1 %v2821_v39, %s2997_s3  ;;  %v1404_v47 = vadd.f32 1.0, %v2825_v45  ;;  %v2827_v48 = vpop.eup %2826 }
 0xe9e   :  { %2828 = vrcp.f32 %v1403_v46  ;;  %v1292_v51 = vadd.f32 1.0, %v2827_v48 }
 0xe9f   :  { %2830 = vrcp.f32 %v1404_v47 }
 0xea0   :  { %2832 = vrcp.f32 %v1292_v51 }
 0xea8   :  { %v2829_v52 = vpop.eup %2828 }
 0xea9   :  { %v2831_v41 = vpop.eup %2830  ;;  %v1417_v63 = vmul.f32 %v2829_v52, %v1413_v49 }
 0xeaa   :  { %v2833_v58 = vpop.eup %2832  ;;  %v1418_v0 = vmul.f32 %v2831_v41, %v1414_v50 }
 0xeab   :  { %v1296_v4 = vmul.f32 %v2833_v58, %v3328_v61 }
 0xf0b   :  { %v1422_v40 = vpop.permute.xlu1 %1421 }
 0xf0c   :  { %v1424_v54 = vpop.permute.xlu0 %1423  ;;  %v1427_v55 = vmul.f32 %v2829_v52, %v1422_v40 }
 0xf0d   :  { %v1428_v56 = vmul.f32 %v2831_v41, %v1424_v54 }
 0xf0e   :  { %1431 = vrot.lane.b32.xlu0 %v1427_v55, %s3002_s28 }
 0xf0f   :  { %1433 = vrot.lane.b32.xlu1 %v1428_v56, %s3002_s28  ;;  %v1299_v59 = vpop.permute.xlu1 %1298 }
 0xf10   :  { %v1301_v60 = vmul.f32 %v2833_v58, %v1299_v59 }
 0xf12   :  { %1303 = vrot.lane.b32.xlu0 %v1301_v60, %s3002_s28 }
 0xf80   :  { %v1432_v1 = vpop.permute.xlu0 %1431 }
 0xf81   :  { %v1434_v2 = vpop.permute.xlu1 %1433  ;;  %v3368_v3 = vadd.f32 %v1432_v1, %v1417_v63 }
 0xf82   :  { %v3370_v53 = vadd.f32 %v1434_v2, %v1418_v0 }
 0xf83   :  { %2834 = vtanh.f32 %v3368_v3 }
 0xf84   :  { %2836 = vtanh.f32 %v3370_v53  ;;  %v1304_v6 = vpop.permute.xlu0 %1303  ;;  %v1664_v2 = vrot.slane %v3370_v53, 7 }
 0xf85   :  { %v3375_v8 = vadd.f32 %v1304_v6, %v1296_v4 }
 0xf87   :  { %2838 = vtanh.f32 %v3375_v8 }
 0xf8d   :  { %v2835_v57 = vpop.eup %2834 }
 0xf8e   :  { %v2837_v44 = vpop.eup %2836  ;;  %1443 = vrot.lane.b32.xlu1 %v2835_v57, %s2997_s3  ;;  %v1663_v57 = vrot.slane %v3368_v3, 7 }
 0xf8f   :  { %1445 = vrot.lane.b32.xlu0 %v2837_v44, %s2997_s3 }
 0xf91   :  { %v2839_v9 = vpop.eup %2838 }
 0xf92   :  { %1309 = vrot.lane.b32.xlu1 %v2839_v9, %s2997_s3 }
0x1000   :  { %v1444_v10 = vpop.permute.xlu1 %1443 }
0x1001   :  { %v1446_v11 = vpop.permute.xlu0 %1445  ;;  %v1449_v13 = vmul.f32 %v2829_v52, %v1444_v10 }
0x1002   :  { %v1450_v12 = vmul.f32 %v2831_v41, %v1446_v11 }
0x1003   :  { %v1563_v17 = vrot.slane %v1449_v13, 5 }
0x1004   :  { %v1453_v61 = vrot.slane %v1450_v12, 7  ;;  %v1310_v14 = vpop.permute.xlu1 %1309  ;;  %v1564_v15 = vrot.slane %v1450_v12, 4 }
0x1005   :  { %v1312_v18 = vmul.f32 %v2833_v58, %v1310_v14 }
0x1006   :  { %v1455_v20 = vsel %vm1454_vm9, %v1453_v61, %v1449_v13  ;;  %v1565_v22 = vsel %vm218_vm2, %v1564_v15, %v1563_v17 }
0x1007   :  { %1456 = vrot.lane.b32.xlu0 %v1455_v20, %s3002_s28  ;;  %v1460_v21 = vrot.slane %v1312_v18, 3 }
0x1009   :  { %1461 = vrot.lane.b32.xlu1 %v1460_v21, %s2997_s3 }
0x100b   :  { %1566 = vrot.lane.b32.xlu0 %v1565_v22, %s3002_s28 }
0x1079   :  { %v1457_v23 = vpop.permute.xlu0 %1456 }
0x107b   :  { %v1462_v24 = vpop.permute.xlu1 %1461 }
0x107c   :  { %v1464_v27 = vsel %vm222_vm3, %v1457_v23, %v1462_v24 }
0x107d   :  { %v1567_v28 = vpop.permute.xlu0 %1566  ;;  %v1466_v29 = vrot.slane %v1464_v27, 5 }
0x107e   :  { %2492 = vmatmul.mubr.msk.f32.vlgmr.msra.gmra.mrb[12].mxu0 %vm222_vm3, %v1567_v28 }
0x107f   :  { %2658 = vmatpush3.bf16.msra.mxu0 %v3120_v26  ;;  %2510 = vmatprep.mubr.msk.f32.mxu0 %vm2999_vm1, %v3000_v33 }
0x1080   :  { %2481 = vmatmul.mubr.msk.f32.vlgmr.msra.gmra.mrb[10].mxu1 %vm463_vm5, %v1466_v29  ;;  %2659 = vmatprep.subr.bf16.mxu0 %v2998_v25 }
0x1081   :  { %2670 = vmatpush3.bf16.msra.mxu1 %v3122_v30  ;;  %2521 = vmatprep.mubr.msk.f32.mxu1 %vm2999_vm1, %v3000_v33 }
0x1082   :  { %2671 = vmatprep.subr.bf16.mxu1 %v2998_v25 }
0x1083   :  { %2661 = vmatpush3.bf16.msra.mxu0 %v3129_v34 }
0x1084   :  { %2662 = vmatprep.subr.bf16.mxu0 %v2998_v25 }
0x1085   :  { %2673 = vmatpush3.bf16.msra.mxu1 %v3133_v35 }
0x1086   :  { %2674 = vmatprep.subr.bf16.mxu1 %v2998_v25 }
0x1087   :  { %2664 = vmatpush3.bf16.msra.mxu0 %v3184_v31 }
0x1088   :  { %2665 = vmatprep.subr.bf16.mxu0 %v2998_v25 }
0x108b   :  { %2667 = vmatpush3.bf16.msra.mxu0 %v3188_v37 }
0x108c   :  { %2686 = vmatprep.subr.bf16.mxu0 %v2998_v25 }
0x1151   :  { %v1636_v30 = vpop.f32.mrb[12].mxu0 }
0x1152   :  { %v1641_v32 = vrot.slane %v1636_v30, 2  ;;  %v1642_v36 = vrot.slane %v1636_v30, 3  ;;  %v2493_v38 = vpop.f32.mrb[13].mxu0 }
0x1153   :  { %v1535_v39 = vpop.f32.mrb[10].mxu1 }
0x1154   :  { %v1646_v42 = vadd.f32 %v1642_v36, %v3102_v5  ;;  %v2482_v43 = vpop.f32.mrb[11].mxu1  ;;  %v1645_v35 = vadd.f32 %v1641_v32, %v3104_v7  ;;  %v1536_v19 = vadd.f32 %v3166_v62, %v1535_v39 }
0x1155   :  { %v3446_v43 = vld [vmem:[#allocation6 + $0x40] ss:$0 sm:$0xff] }
0x1156   :  { %2840 = vtanh.f32 %v1646_v42  ;;  %v2196_v47 = vmul.f32 -1.442695, %v1646_v42  ;;  %v2195_v48 = vmul.f32 -1.442695, %v1645_v35  ;;  %v2193_v51 = vmul.f32 -1.442695, %v1536_v19 }
0x1157   :  { %2842 = vtanh.f32 %v1645_v35 }
0x1158   :  { %2844 = vtanh.f32 %v1536_v19 }
0x1159   :  { %2846 = vpow2.f32 %v2196_v47 }
0x115a   :  { %2848 = vpow2.f32 %v2195_v48 }
0x115b   :  { %2850 = vpow2.f32 %v2193_v51 }
0x1160   :  { %v2841_v16 = vpop.eup %2840 }
0x1161   :  { %1673 = vrot.lane.b32.xlu1 %v2841_v16, %s2997_s3  ;;  %v2843_v45 = vpop.eup %2842 }
0x1162   :  { %v2845_v46 = vpop.eup %2844 }
0x1163   :  { %1548 = vrot.lane.b32.xlu0 %v2845_v46, %s2997_s3  ;;  %v2847_v52 = vpop.eup %2846 }
0x1164   :  { %v2849_v40 = vpop.eup %2848  ;;  %v1654_v62 = vadd.f32 1.0, %v2847_v52 }
0x1165   :  { %1671 = vrot.lane.b32.xlu1 %v2843_v45, %s2997_s3  ;;  %v2851_v41 = vpop.eup %2850  ;;  %v1653_v54 = vadd.f32 1.0, %v2849_v40 }
0x1166   :  { %2852 = vrcp.f32 %v1654_v62  ;;  %v1542_v55 = vadd.f32 1.0, %v2851_v41 }
0x1167   :  { %2854 = vrcp.f32 %v1653_v54 }
0x1168   :  { %2856 = vrcp.f32 %v1542_v55 }
0x1170   :  { %v2853_v56 = vpop.eup %2852 }
0x1171   :  { %v2855_v60 = vpop.eup %2854  ;;  %v1668_v4 = vmul.f32 %v2853_v56, %v1664_v2 }
0x1172   :  { %v2857_v49 = vpop.eup %2856  ;;  %v1667_v10 = vmul.f32 %v2855_v60, %v1663_v57 }
0x1173   :  { %v1546_v9 = vmul.f32 %v2857_v49, %v3375_v8 }
0x11d3   :  { %v1674_v58 = vpop.permute.xlu1 %1673 }
0x11d4   :  { %v1678_v59 = vmul.f32 %v2853_v56, %v1674_v58 }
0x11d5   :  { %v1549_v50 = vpop.permute.xlu0 %1548 }
0x11d6   :  { %1683 = vrot.lane.b32.xlu0 %v1678_v59, %s3002_s28  ;;  %v1551_v0 = vmul.f32 %v2857_v49, %v1549_v50 }
0x11d7   :  { %v1672_v63 = vpop.permute.xlu1 %1671 }
0x11d8   :  { %v1677_v1 = vmul.f32 %v2855_v60, %v1672_v63  ;;  %1553 = vrot.lane.b32.xlu1 %v1551_v0, %s3002_s28 }
0x11da   :  { %1681 = vrot.lane.b32.xlu0 %v1677_v1, %s3002_s28 }
0x1248   :  { %v1684_v6 = vpop.permute.xlu0 %1683 }
0x1249   :  { %v3415_v44 = vadd.f32 %v1684_v6, %v1668_v4 }
0x124a   :  { %v1554_v11 = vpop.permute.xlu1 %1553 }
0x124b   :  { %2858 = vtanh.f32 %v3415_v44  ;;  %v3419_v13 = vadd.f32 %v1554_v11, %v1546_v9  ;;  %v1914_v4 = vrot.slane %v3415_v44, 7 }
0x124c   :  { %v1682_v12 = vpop.permute.xlu0 %1681 }
0x124d   :  { %v3421_v61 = vadd.f32 %v1682_v12, %v1667_v10  ;;  %2860 = vtanh.f32 %v3419_v13 }
0x124f   :  { %2862 = vtanh.f32 %v3421_v61  ;;  %v1913_v6 = vrot.slane %v3421_v61, 7 }
0x1255   :  { %v2859_v53 = vpop.eup %2858 }
0x1256   :  { %1695 = vrot.lane.b32.xlu1 %v2859_v53, %s2997_s3 }
0x1257   :  { %v2861_v3 = vpop.eup %2860 }
0x1258   :  { %1559 = vrot.lane.b32.xlu0 %v2861_v3, %s2997_s3 }
0x1259   :  { %v2863_v14 = vpop.eup %2862 }
0x125a   :  { %1693 = vrot.lane.b32.xlu1 %v2863_v14, %s2997_s3 }
0x12c8   :  { %v1696_v8 = vpop.permute.xlu1 %1695 }
0x12c9   :  { %v1700_v15 = vmul.f32 %v2853_v56, %v1696_v8 }
0x12ca   :  { %v1560_v17 = vpop.permute.xlu0 %1559 }
0x12cb   :  { %v1562_v18 = vmul.f32 %v2857_v49, %v1560_v17  ;;  %v1703_v21 = vrot.slane %v1700_v15, 7  ;;  %v1814_v28 = vrot.slane %v1700_v15, 5 }
0x12cc   :  { %v1694_v20 = vpop.permute.xlu1 %1693 }
0x12cd   :  { %v1699_v22 = vmul.f32 %v2855_v60, %v1694_v20  ;;  %v1710_v23 = vrot.slane %v1562_v18, 2 }
0x12cf   :  { %v1813_v24 = vrot.slane %v1699_v22, 6  ;;  %v1705_v27 = vsel %vm1704_vm10, %v1703_v21, %v1699_v22  ;;  %1711 = vrot.lane.b32.xlu1 %v1710_v23, %s2997_s3 }
0x12d0   :  { %1706 = vrot.lane.b32.xlu0 %v1705_v27, %s3002_s28 }
0x12d1   :  { %v1815_v29 = vsel %vm218_vm2, %v1814_v28, %v1813_v24 }
0x12d4   :  { %1816 = vrot.lane.b32.xlu0 %v1815_v29, %s3002_s28 }
0x1341   :  { %v1712_v30 = vpop.permute.xlu1 %1711 }
0x1342   :  { %v1707_v32 = vpop.permute.xlu0 %1706 }
0x1343   :  { %v1714_v36 = vsel %vm222_vm3, %v1707_v32, %v1712_v30 }
0x1344   :  { %v1716_v38 = vrot.slane %v1714_v36, 6 }
0x1346   :  { %2511 = vmatmul.mubr.msk.f32.vlgmr.msra.gmra.mrb[14].mxu0 %vm463_vm5, %v1716_v38  ;;  %v1817_v39 = vpop.permute.xlu0 %1816 }
0x1347   :  { %2522 = vmatmul.mubr.msk.f32.vlgmr.msra.gmra.mrb[12].mxu1 %vm222_vm3, %v1817_v39  ;;  %2551 = vmatprep.mubr.msk.f32.mxu0 %vm2999_vm1, %v3000_v33 }
0x1348   :  { %2676 = vmatpush3.bf16.msra.mxu1 %v3120_v26  ;;  %2540 = vmatprep.mubr.msk.f32.mxu1 %vm2999_vm1, %v3000_v33 }
0x1349   :  { %2677 = vmatprep.subr.bf16.mxu1 %v2998_v25 }
0x134c   :  { %2679 = vmatpush3.bf16.msra.mxu1 %v3129_v34 }
0x134d   :  { %2680 = vmatprep.subr.bf16.mxu1 %v2998_v25 }
0x1350   :  { %2682 = vmatpush3.bf16.msra.mxu1 %v3184_v31 }
0x1351   :  { %2683 = vmatprep.subr.bf16.mxu1 %v2998_v25 }
0x1354   :  { %2685 = vmatpush3.bf16.msra.mxu1 %v3188_v37 }
0x1419   :  { %v1785_v42 = vpop.f32.mrb[14].mxu0 }
0x141a   :  { %v1786_v26 = vadd.f32 %v3446_v43, %v1785_v42  ;;  %v2512_v35 = vpop.f32.mrb[15].mxu0  ;;  %v1886_v19 = vpop.f32.mrb[12].mxu1 }
0x141b   :  { %v1891_v33 = vrot.slane %v1886_v19, 1  ;;  %v1892_v16 = vrot.slane %v1886_v19, 2  ;;  %v2523_v45 = vpop.f32.mrb[13].mxu1 }
0x141c   :  { %2864 = vtanh.f32 %v1786_v26  ;;  %v2198_v48 = vmul.f32 -1.442695, %v1786_v26 }
0x141d   :  { %v1895_v34 = vadd.f32 %v1891_v33, %v3104_v7  ;;  %v1896_v46 = vadd.f32 %v1892_v16, %v3102_v5 }
0x141f   :  { %2866 = vtanh.f32 %v1895_v34  ;;  %v2200_v51 = vmul.f32 -1.442695, %v1895_v34  ;;  %v2201_v52 = vmul.f32 -1.442695, %v1896_v46 }
0x1420   :  { %2868 = vtanh.f32 %v1896_v46 }
0x1421   :  { %2870 = vpow2.f32 %v2198_v48  ;;  %v2071_v48 = vld [vmem:[#allocation7 + $0x10] sm:$0xff] }
0x1422   :  { %2872 = vpow2.f32 %v2200_v51 }
0x1423   :  { %2874 = vpow2.f32 %v2201_v52  ;;  %v2072_v52 = vld [vmem:[#allocation7 + $0x18] sm:$0xff] }
0x1426   :  { %v2865_v31 = vpop.eup %2864 }
0x1427   :  { %1798 = vrot.lane.b32.xlu1 %v2865_v31, %s2997_s3 }
0x1429   :  { %v2867_v37 = vpop.eup %2866 }
0x142a   :  { %v2869_v47 = vpop.eup %2868 }
0x142b   :  { %1923 = vrot.lane.b32.xlu0 %v2869_v47, %s2997_s3  ;;  %1921 = vrot.lane.b32.xlu1 %v2867_v37, %s2997_s3  ;;  %v2871_v7 = vpop.eup %2870  ;;  %v2070_v47 = vld [vmem:[#allocation7 + $0x8] sm:$0xff] }
0x142c   :  { %v2873_v40 = vpop.eup %2872  ;;  %v1792_v5 = vadd.f32 1.0, %v2871_v7  ;;  %v2690_v7 = vpack.c.bf16 %v2072_v52, %v2071_v48 }
0x142d   :  { %v2875_v62 = vpop.eup %2874  ;;  %v1903_v41 = vadd.f32 1.0, %v2873_v40 }
0x142e   :  { %2876 = vrcp.f32 %v1792_v5  ;;  %v1904_v54 = vadd.f32 1.0, %v2875_v62 }
0x142f   :  { %2878 = vrcp.f32 %v1903_v41 }
0x1430   :  { %2880 = vrcp.f32 %v1904_v54  ;;  %v2204_v54 = vld [vmem:[#allocation7 + $0x20] ss:$0 sm:$0xff] }
0x1438   :  { %v2877_v55 = vpop.eup %2876 }
0x1439   :  { %v2879_v59 = vpop.eup %2878  ;;  %v1796_v1 = vmul.f32 %v2877_v55, %v3419_v13 }
0x143a   :  { %v2881_v60 = vpop.eup %2880  ;;  %v1917_v10 = vmul.f32 %v2879_v59, %v1913_v6 }
0x143b   :  { %v1918_v9 = vmul.f32 %v2881_v60, %v1914_v4 }
0x1499   :  { %v1799_v56 = vpop.permute.xlu1 %1798 }
0x149a   :  { %v1801_v58 = vmul.f32 %v2877_v55, %v1799_v56 }
0x149c   :  { %1803 = vrot.lane.b32.xlu0 %v1801_v58, %s3002_s28 }
0x149d   :  { %v1924_v49 = vpop.permute.xlu0 %1923  ;;  %v1922_v50 = vpop.permute.xlu1 %1921 }
0x149e   :  { %v1928_v63 = vmul.f32 %v2881_v60, %v1924_v49  ;;  %v1927_v0 = vmul.f32 %v2879_v59, %v1922_v50 }
0x14a0   :  { %1933 = vrot.lane.b32.xlu1 %v1928_v63, %s3002_s28  ;;  %1931 = vrot.lane.b32.xlu0 %v1927_v0, %s3002_s28 }
0x150e   :  { %v1804_v2 = vpop.permute.xlu0 %1803 }
0x150f   :  { %v1806_v57 = vadd.f32 %v1804_v2, %v1796_v1 }
0x1511   :  { %2882 = vtanh.f32 %v1806_v57 }
0x1512   :  { %v1934_v11 = vpop.permute.xlu1 %1933  ;;  %v1932_v12 = vpop.permute.xlu0 %1931 }
0x1513   :  { %v1938_v53 = vadd.f32 %v1934_v11, %v1918_v9  ;;  %v1937_v3 = vadd.f32 %v1932_v12, %v1917_v10 }
0x1515   :  { %2884 = vtanh.f32 %v1938_v53 }
0x1516   :  { %2886 = vtanh.f32 %v1937_v3 }
0x151b   :  { %v2883_v14 = vpop.eup %2882 }
0x151c   :  { %1809 = vrot.lane.b32.xlu1 %v2883_v14, %s2997_s3 }
0x151f   :  { %v2885_v8 = vpop.eup %2884 }
0x1520   :  { %v2887_v13 = vpop.eup %2886  ;;  %1945 = vrot.lane.b32.xlu0 %v2885_v8, %s2997_s3 }
0x1521   :  { %1943 = vrot.lane.b32.xlu1 %v2887_v13, %s2997_s3 }
0x158e   :  { %v1810_v44 = vpop.permute.xlu1 %1809 }
0x158f   :  { %v1812_v18 = vmul.f32 %v2877_v55, %v1810_v44 }
0x1591   :  { %v1961_v22 = vrot.slane %v1812_v18, 1 }
0x1592   :  { %v1946_v61 = vpop.permute.xlu0 %1945 }
0x1593   :  { %v1950_v15 = vmul.f32 %v2881_v60, %v1946_v61  ;;  %v1944_v17 = vpop.permute.xlu1 %1943 }
0x1594   :  { %v1949_v20 = vmul.f32 %v2879_v59, %v1944_v17 }
0x1595   :  { %v1953_v21 = vrot.slane %v1950_v15, 7 }
0x1596   :  { %1954 = vrot.lane.b32.xlu0 %v1949_v20, %s3002_s28 }
0x1597   :  { %1956 = vrot.lane.b32.xlu1 %v1953_v21, %s3002_s28 }
0x159a   :  { %1962 = vrot.lane.b32.xlu0 %v1961_v22, %s2997_s3 }
0x1608   :  { %v1955_v23 = vpop.permute.xlu0 %1954 }
0x1609   :  { %v1957_v24 = vpop.permute.xlu1 %1956 }
0x160c   :  { %v1963_v27 = vpop.permute.xlu0 %1962 }
0x160d   :  { %v1965_v28 = vsel %vm222_vm3, %v1955_v23, %v1963_v27  ;;  %v1966_v29 = vsel %vm222_vm3, %v1957_v24, %v1963_v27 }
0x160e   :  { %v1970_v30 = vrot.slane %v1965_v28, 7  ;;  %v1971_v32 = vrot.slane %v1966_v29, 7 }
0x1610   :  { %v1972_v36 = vsel %vm1969_vm11, %v1970_v30, %v1971_v32 }
0x1611   :  { %2541 = vmatmul.mubr.msk.f32.vlgmr.msra.gmra.mrb[14].mxu1 %vm463_vm5, %v1972_v36 }
0x16e4   :  { %v2041_v38 = vpop.f32.mrb[14].mxu1 }
0x16e5   :  { %v2042_v39 = vadd.f32 %v3446_v43, %v2041_v38  ;;  %v2542_v42 = vpop.f32.mrb[15].mxu1  ;;  %v2069_v43 = vld [vmem:[#allocation7] sm:$0xff] }
0x16e6   :  { %v2687_v51 = vpack.c.bf16 %v2070_v47, %v2069_v43 }
0x16e7   :  { %2888 = vtanh.f32 %v2042_v39  ;;  %v2203_v35 = vmul.f32 -1.442695, %v2042_v39 }
0x16e8   :  { %2688 = vmatpush3.bf16.msra.mxu0 %v2687_v51 }
0x16e9   :  { %2890 = vpow2.f32 %v2203_v35  ;;  %2689 = vmatprep.subr.bf16.mxu0 %v2998_v25 }
0x16ec   :  { %2691 = vmatpush3.bf16.msra.mxu0 %v2690_v7 }
0x16f1   :  { %v2889_v26 = vpop.eup %2888 }
0x16f2   :  { %2054 = vrot.lane.b32.xlu1 %v2889_v26, %s2997_s3 }
0x16f3   :  { %v2891_v19 = vpop.eup %2890 }
0x16f4   :  { %v2048_v33 = vadd.f32 1.0, %v2891_v19 }
0x16f6   :  { %2892 = vrcp.f32 %v2048_v33 }
0x1700   :  { %v2893_v16 = vpop.eup %2892 }
0x1701   :  { %v2052_v46 = vmul.f32 %v2893_v16, %v1806_v57 }
0x1764   :  { %v2055_v45 = vpop.permute.xlu1 %2054 }
0x1765   :  { %v2057_v34 = vmul.f32 %v2893_v16, %v2055_v45 }
0x1767   :  { %2059 = vrot.lane.b32.xlu0 %v2057_v34, %s3002_s28 }
0x17d9   :  { %v2060_v31 = vpop.permute.xlu0 %2059 }
0x17da   :  { %v2062_v37 = vadd.f32 %v2060_v31, %v2052_v46 }
0x17dc   :  { %2894 = vtanh.f32 %v2062_v37 }
0x17e6   :  { %v2895_v40 = vpop.eup %2894 }
0x17e7   :  { %2065 = vrot.lane.b32.xlu1 %v2895_v40, %s2997_s3 }
0x1859   :  { %v2066_v5 = vpop.permute.xlu1 %2065 }
0x185a   :  { %v2068_v62 = vmul.f32 %v2893_v16, %v2066_v5 }
0x185c   :  { %2079 = vrot.lane.b32.xlu0 %v2068_v62, %s3002_s28 }
0x18ce   :  { %v2080_v41 = vpop.permute.xlu0 %2079 }
0x18cf   :  { %2552 = vmatmul.mubr.msk.f32.vlgmr.msra.gmra.mrb[16].mxu0 %vm222_vm3, %v2080_v41 }
0x19a2   :  { %v2149_v55 = vpop.f32.mrb[16].mxu0 }
0x19a3   :  { %v2150_v56 = vadd.f32 %v2204_v54, %v2149_v55  ;;  %v2553_v58 = vpop.f32.mrb[17].mxu0 }
0x19a5   :  { %2153 = vst [vmem:[%s3483_s4] sm:$0x3] %v2150_v56 }
0x19a6   :  { %2158 = vsyncpa [#allocation3], 1 }
0x19a7   :  { %2159 = vsyncpa [#allocation5], 1 }
0x19a8   :  { %2160 = vsyncpa [#allocation8], 1 }

</bundles_post_ra>
